<compile_context>
chip_gen: v7x
topology: tpu7x:2x2x1
jax: 0.10.0
libtpu: 0.0.40
codegen_flags: <defaults>
</compile_context>

<pallas_src>
import jax
import jax.numpy as jnp
import numpy as np
from jax import lax
from jax.experimental import pallas as pl
from jax.experimental.pallas import tpu as pltpu

VOCAB = 128
BLOCK_SIZE = 32          # block_size in the PyTorch code
N_EMBD = 64              # n_embd
N_HEAD = 2               # n_head
N_LAYER = 4              # n_layer
HEAD_SIZE = N_EMBD // N_HEAD
EPS = 1e-5               # nn.LayerNorm default eps


# ---------------------------------------------------------------------------
# Fused Pallas kernel: one (batch, layer) grid step = one transformer block.
# Residual stream is carried in VMEM scratch across the layer axis.
# ---------------------------------------------------------------------------
def _layernorm(x, g, b):
    mu = jnp.mean(x, axis=-1, keepdims=True)
    var = jnp.mean(jnp.square(x - mu), axis=-1, keepdims=True)
    return (x - mu) * lax.rsqrt(var + EPS) * g + b


def encoder_kernel(x_ref,
                   ln1g_ref, ln1b_ref, wqkv_ref,
                   wproj_ref, bproj_ref, ln2g_ref, ln2b_ref,
                   w1_ref, b1_ref, w2_ref, b2_ref,
                   lnfg_ref, lnfb_ref,
                   x_out_ref, attn_out_ref,
                   xres_ref):
    l = pl.program_id(1)
    T = BLOCK_SIZE
    scale = HEAD_SIZE ** -0.5

    # Initialize the resident residual stream at the first layer step.
    @pl.when(l == 0)
    def _():
        xres_ref[...] = x_ref[0]

    x = xres_ref[...]                                            # (T, C)

    # ---- ln1 -> fused QKV -> multi-head self-attention (unmasked) --------
    h = _layernorm(x, ln1g_ref[0], ln1b_ref[0])
    qkv = jnp.dot(h, wqkv_ref[0], preferred_element_type=jnp.float32)  # (T, 3C)
    q = qkv[:, 0:N_EMBD]
    k = qkv[:, N_EMBD:2 * N_EMBD]
    v = qkv[:, 2 * N_EMBD:3 * N_EMBD]

    wproj = wproj_ref[0]                                         # (C, C)
    sa = jnp.zeros((T, N_EMBD), jnp.float32)
    for hh in range(N_HEAD):                                     # static unroll
        lo = hh * HEAD_SIZE
        qh = q[:, lo:lo + HEAD_SIZE]
        kh = k[:, lo:lo + HEAD_SIZE]
        vh = v[:, lo:lo + HEAD_SIZE]
        # contract last dims directly: no kh.T materialization
        wei = lax.dot_general(qh, kh, (((1,), (1,)), ((), ())),
                              preferred_element_type=jnp.float32) * scale
        wei = jnp.exp(wei - jnp.max(wei, axis=-1, keepdims=True))
        inv = 1.0 / jnp.sum(wei, axis=-1, keepdims=True)         # exact, (T,1)
        wei = wei * inv                                          # softmax
        # stream this head's attention map out now (static column offset)
        attn_out_ref[0, 0, :, hh * T:(hh + 1) * T] = wei
        head_out = jnp.dot(wei, vh, preferred_element_type=jnp.float32)
        # per-head projection slice: no concatenate of head outputs
        sa = sa + jnp.dot(head_out, wproj[lo:lo + HEAD_SIZE, :],
                          preferred_element_type=jnp.float32)

    x = x + sa + bproj_ref[0]                                    # residual 1

    # ---- ln2 -> feed-forward ---------------------------------------------
    h2 = _layernorm(x, ln2g_ref[0], ln2b_ref[0])
    ff = jnp.dot(h2, w1_ref[0], preferred_element_type=jnp.float32) + b1_ref[0]
    ff = jnp.maximum(ff, 0.0)                                    # ReLU
    ff = jnp.dot(ff, w2_ref[0], preferred_element_type=jnp.float32) + b2_ref[0]
    x = x + ff                                                   # residual 2

    xres_ref[...] = x                                            # carry

    # final LayerNorm fused on the last layer step
    @pl.when(l == N_LAYER - 1)
    def _():
        x_out_ref[0] = _layernorm(x, lnfg_ref[...], lnfb_ref[...])


# ---------------------------------------------------------------------------
# pallas_call wrapper
# ---------------------------------------------------------------------------
def encoder_pallas(x, params):
    B, T, C = x.shape
    A = N_HEAD * T

    def per_layer(shape):
        nd = len(shape)
        return pl.BlockSpec((1,) + shape, lambda b, l, nd=nd: (l,) + (0,) * nd)

    in_specs = [
        pl.BlockSpec((1, T, C), lambda b, l: (b, 0, 0)),          # x
        per_layer((1, C)), per_layer((1, C)),                     # ln1 g/b
        per_layer((C, 3 * C)),                                    # wqkv (fused)
        per_layer((C, C)), per_layer((1, C)),                     # wproj, bproj
        per_layer((1, C)), per_layer((1, C)),                     # ln2 g/b
        per_layer((C, 4 * C)), per_layer((1, 4 * C)),             # w1, b1
        per_layer((4 * C, C)), per_layer((1, C)),                 # w2, b2
        pl.BlockSpec((1, C), lambda b, l: (0, 0)),                # lnf gamma
        pl.BlockSpec((1, C), lambda b, l: (0, 0)),                # lnf beta
    ]
    out_shapes = (jax.ShapeDtypeStruct((B, T, C), jnp.float32),
                  jax.ShapeDtypeStruct((B, N_LAYER, T, A), jnp.float32))
    out_specs = (pl.BlockSpec((1, T, C), lambda b, l: (b, 0, 0)),
                 pl.BlockSpec((1, 1, T, A), lambda b, l: (b, l, 0, 0)))

    return pl.pallas_call(
        encoder_kernel,
        out_shape=out_shapes,
        grid=(B, N_LAYER),
        in_specs=in_specs,
        out_specs=out_specs,
        scratch_shapes=[pltpu.VMEM((T, C), jnp.float32)],         # residual carry
        compiler_params=pltpu.CompilerParams(
            dimension_semantics=("parallel", "arbitrary"),
            vmem_limit_bytes=32 * 1024 * 1024),
    )(x,
      params['ln1g'], params['ln1b'], params['wqkv'],
      params['wproj'], params['bproj'], params['ln2g'], params['ln2b'],
      params['w1'], params['b1'], params['w2'], params['b2'],
      params['lnf_g'], params['lnf_b'])


def encoder_forward(idx, params):
    """Mirrors Encoder.forward: returns (ln_f(x), attn_maps (L, H, B, T, T))."""
    B, T = idx.shape
    # TODO(synk): embedding gather stays in plain JAX (tiny, no clean win in-kernel).
    tok = params['tok_emb'][idx]
    pos = params['pos_emb'][:T]
    x = (tok + pos[None]).astype(jnp.float32)

    x_out, attn_packed = encoder_pallas(x, params)
    # (B, L, T, H*T) -> (L, H, B, T, T) matching PyTorch's flat attn list order.
    attn = attn_packed.reshape(B, N_LAYER, T, N_HEAD, T)
    attn = jnp.transpose(attn, (1, 3, 0, 2, 4))
    return x_out, attn


# ---------------------------------------------------------------------------
# Deterministic parameter init (PyTorch-like: normal(0, 0.02) weights).
# Weights stored pre-transposed as (in_features, out_features); per-layer
# tensors stacked along a leading (N_LAYER, ...) axis; Q/K/V fused to (C, 3C).
# ---------------------------------------------------------------------------
def init_params(key):
    def normal(k, shape, std=0.02):
        return std * jax.random.normal(k, shape, jnp.float32)

    ks = jax.random.split(key, 4 + N_LAYER)
    params = {
        'tok_emb': normal(ks[0], (VOCAB, N_EMBD)),
        'pos_emb': normal(ks[1], (BLOCK_SIZE, N_EMBD)),
        'lnf_g': 1.0 + normal(ks[2], (1, N_EMBD)),
        'lnf_b': normal(ks[3], (1, N_EMBD)),
    }
    wqkv, wproj, bproj, w1, b1, w2, b2 = ([] for _ in range(7))
    ln1g, ln1b, ln2g, ln2b = ([] for _ in range(4))
    for l in range(N_LAYER):
        bk = jax.random.split(ks[4 + l], 11)
        wqkv.append(normal(bk[0], (N_EMBD, 3 * N_EMBD)))   # [q | k | v]
        wproj.append(normal(bk[1], (N_EMBD, N_EMBD)))
        bproj.append(normal(bk[2], (1, N_EMBD)))
        w1.append(normal(bk[3], (N_EMBD, 4 * N_EMBD)))
        b1.append(normal(bk[4], (1, 4 * N_EMBD)))
        w2.append(normal(bk[5], (4 * N_EMBD, N_EMBD)))
        b2.append(normal(bk[6], (1, N_EMBD)))
        ln1g.append(1.0 + normal(bk[7], (1, N_EMBD)))
        ln1b.append(normal(bk[8], (1, N_EMBD)))
        ln2g.append(1.0 + normal(bk[9], (1, N_EMBD)))
        ln2b.append(normal(bk[10], (1, N_EMBD)))
    params.update(
        ln1g=jnp.stack(ln1g), ln1b=jnp.stack(ln1b),
        ln2g=jnp.stack(ln2g), ln2b=jnp.stack(ln2b),
        wqkv=jnp.stack(wqkv),
        wproj=jnp.stack(wproj), bproj=jnp.stack(bproj),
        w1=jnp.stack(w1), b1=jnp.stack(b1),
        w2=jnp.stack(w2), b2=jnp.stack(b2),
    )
    return params


# ---------------------------------------------------------------------------
# Pure-JAX reference for correctness checking
# ---------------------------------------------------------------------------
def _ln_ref(x, g, b):
    mu = jnp.mean(x, axis=-1, keepdims=True)
    var = jnp.mean((x - mu) ** 2, axis=-1, keepdims=True)
    return (x - mu) / jnp.sqrt(var + EPS) * g + b


def reference_forward(idx, params):
    B, T = idx.shape
    x = params['tok_emb'][idx] + params['pos_emb'][:T][None]
    attn_maps = []
    for l in range(N_LAYER):
        h = _ln_ref(x, params['ln1g'][l, 0], params['ln1b'][l, 0])
        qkv = h @ params['wqkv'][l]
        q = qkv[..., 0:N_EMBD]
        k = qkv[..., N_EMBD:2 * N_EMBD]
        v = qkv[..., 2 * N_EMBD:3 * N_EMBD]
        heads, weis = [], []
        for hh in range(N_HEAD):
            sl = slice(hh * HEAD_SIZE, (hh + 1) * HEAD_SIZE)
            wei = jnp.einsum('btd,bsd->bts', q[..., sl], k[..., sl]) * HEAD_SIZE ** -0.5
            wei = jax.nn.softmax(wei, axis=-1)
            weis.append(wei)
            heads.append(jnp.einsum('bts,bsd->btd', wei, v[..., sl]))
        attn_maps.append(jnp.stack(weis, axis=0))          # (H, B, T, T)
        x = x + jnp.concatenate(heads, axis=-1) @ params['wproj'][l] + params['bproj'][l, 0]
        h2 = _ln_ref(x, params['ln2g'][l, 0], params['ln2b'][l, 0])
        x = x + (jax.nn.relu(h2 @ params['w1'][l] + params['b1'][l, 0])
                 @ params['w2'][l] + params['b2'][l, 0])
    attn_maps = jnp.stack(attn_maps, axis=0)               # (L, H, B, T, T)
    x = _ln_ref(x, params['lnf_g'][0], params['lnf_b'][0])
    return x, attn_maps


# ---------------------------------------------------------------------------
if __name__ == "__main__":
    key = jax.random.PRNGKey(0)
    k_idx, k_par = jax.random.split(key, 2)

    B, T = 2, BLOCK_SIZE
    idx = jax.random.randint(k_idx, (B, T), 0, VOCAB, dtype=jnp.int32)
    params = init_params(k_par)

    x_out, attn = encoder_forward(idx, params)
    x_out = jax.block_until_ready(x_out)
    attn = jax.block_until_ready(attn)

    ref_x, ref_attn = reference_forward(idx, params)
    assert x_out.shape == (B, T, N_EMBD)
    assert attn.shape == (N_LAYER, N_HEAD, B, T, T)
    assert np.all(np.isfinite(np.asarray(x_out)))
    assert np.allclose(np.asarray(x_out), np.asarray(ref_x), rtol=2e-3, atol=2e-3)
    assert np.allclose(np.asarray(attn), np.asarray(ref_attn), rtol=1e-4, atol=1e-5)

    print("KERNEL_OK")
</pallas_src>

<mosaic_0001>
module attributes {stable_mosaic.version = 11 : i64} {
  func.func @encoder_kernel(%arg0: i32, %arg1: i32, %arg2: memref<1x32x64xf32, #tpu.memory_space<vmem>>, %arg3: memref<1x1x64xf32, #tpu.memory_space<vmem>>, %arg4: memref<1x1x64xf32, #tpu.memory_space<vmem>>, %arg5: memref<1x64x192xf32, #tpu.memory_space<vmem>>, %arg6: memref<1x64x64xf32, #tpu.memory_space<vmem>>, %arg7: memref<1x1x64xf32, #tpu.memory_space<vmem>>, %arg8: memref<1x1x64xf32, #tpu.memory_space<vmem>>, %arg9: memref<1x1x64xf32, #tpu.memory_space<vmem>>, %arg10: memref<1x64x256xf32, #tpu.memory_space<vmem>>, %arg11: memref<1x1x256xf32, #tpu.memory_space<vmem>>, %arg12: memref<1x256x64xf32, #tpu.memory_space<vmem>>, %arg13: memref<1x1x64xf32, #tpu.memory_space<vmem>>, %arg14: memref<1x64xf32, #tpu.memory_space<vmem>>, %arg15: memref<1x64xf32, #tpu.memory_space<vmem>>, %arg16: memref<1x32x64xf32, #tpu.memory_space<vmem>>, %arg17: memref<1x1x32x64xf32, #tpu.memory_space<vmem>>, %arg18: memref<32x64xf32, #tpu.memory_space<vmem>>) attributes {dimension_semantics = [#tpu.dimension_semantics<parallel>, #tpu.dimension_semantics<arbitrary>], iteration_bounds = array<i64: 2, 4>, scalar_prefetch = 0 : i64, scratch_operands = 1 : i64, tpu.core_type = #tpu.core_type<tc>, window_params = [{transform_indices = @transform_0, window_bounds = array<i64: 1, 32, 64>}, {transform_indices = @transform_1, window_bounds = array<i64: 1, 1, 64>}, {transform_indices = @transform_2, window_bounds = array<i64: 1, 1, 64>}, {transform_indices = @transform_3, window_bounds = array<i64: 1, 64, 192>}, {transform_indices = @transform_4, window_bounds = array<i64: 1, 64, 64>}, {transform_indices = @transform_5, window_bounds = array<i64: 1, 1, 64>}, {transform_indices = @transform_6, window_bounds = array<i64: 1, 1, 64>}, {transform_indices = @transform_7, window_bounds = array<i64: 1, 1, 64>}, {transform_indices = @transform_8, window_bounds = array<i64: 1, 64, 256>}, {transform_indices = @transform_9, window_bounds = array<i64: 1, 1, 256>}, {transform_indices = @transform_10, window_bounds = array<i64: 1, 256, 64>}, {transform_indices = @transform_11, window_bounds = array<i64: 1, 1, 64>}, {pipeline_mode = #tpu.pipeline_mode<synchronous>, transform_indices = @transform_12, window_bounds = array<i64: 1, 64>}, {pipeline_mode = #tpu.pipeline_mode<synchronous>, transform_indices = @transform_13, window_bounds = array<i64: 1, 64>}, {transform_indices = @transform_14, window_bounds = array<i64: 1, 32, 64>}, {transform_indices = @transform_15, window_bounds = array<i64: 1, 1, 32, 64>}]} {
    %c0_i32 = arith.constant 0 : i32
    %0 = arith.cmpi eq, %arg1, %c0_i32 : i32
    %1 = arith.extui %0 : i1 to i32
    %c0_i32_0 = arith.constant 0 : i32
    %2 = arith.cmpi ne, %1, %c0_i32_0 : i32
    scf.if %2 {
      %c0_73 = arith.constant 0 : index
      %c0_74 = arith.constant 0 : index
      %c0_75 = arith.constant 0 : index
      %139 = vector.load %arg2[%c0_73, %c0_74, %c0_75] : memref<1x32x64xf32, #tpu.memory_space<vmem>>, vector<1x32x64xf32>
      %140 = vector.shape_cast %139 : vector<1x32x64xf32> to vector<32x64xf32>
      %c0_76 = arith.constant 0 : index
      %c0_77 = arith.constant 0 : index
      %141 = vector.load %arg18[%c0_76, %c0_77] : memref<32x64xf32, #tpu.memory_space<vmem>>, vector<32x64xf32>
      tpu.vector_store %arg18[%c0_76, %c0_77], %140 {strides = array<i32>} : memref<32x64xf32, #tpu.memory_space<vmem>>, vector<32x64xf32>,
    } else {
    }
    %c0 = arith.constant 0 : index
    %c0_1 = arith.constant 0 : index
    %3 = vector.load %arg18[%c0, %c0_1] : memref<32x64xf32, #tpu.memory_space<vmem>>, vector<32x64xf32>
    %c0_2 = arith.constant 0 : index
    %c0_3 = arith.constant 0 : index
    %c0_4 = arith.constant 0 : index
    %4 = vector.load %arg3[%c0_2, %c0_3, %c0_4] : memref<1x1x64xf32, #tpu.memory_space<vmem>>, vector<1x1x64xf32>
    %5 = vector.shape_cast %4 : vector<1x1x64xf32> to vector<1x64xf32>
    %c0_5 = arith.constant 0 : index
    %c0_6 = arith.constant 0 : index
    %c0_7 = arith.constant 0 : index
    %6 = vector.load %arg4[%c0_5, %c0_6, %c0_7] : memref<1x1x64xf32, #tpu.memory_space<vmem>>, vector<1x1x64xf32>
    %7 = vector.shape_cast %6 : vector<1x1x64xf32> to vector<1x64xf32>
    %cst = arith.constant dense<0.000000e+00> : vector<32xf32>
    %8 = vector.multi_reduction <add>, %3, %cst [1] : vector<32x64xf32> to vector<32xf32>
    %9 = vector.shape_cast %8 : vector<32xf32> to vector<32x1xf32>
    %cst_8 = arith.constant 6.400000e+01 : f32
    %10 = vector.broadcast %cst_8 : f32 to vector<32x1xf32>
    %11 = arith.divf %9, %10 : vector<32x1xf32>
    %12 = vector.broadcast %11 : vector<32x1xf32> to vector<32x64xf32>
    %13 = arith.subf %3, %12 : vector<32x64xf32>
    %14 = arith.mulf %13, %13 : vector<32x64xf32>
    %cst_9 = arith.constant dense<0.000000e+00> : vector<32xf32>
    %15 = vector.multi_reduction <add>, %14, %cst_9 [1] : vector<32x64xf32> to vector<32xf32>
    %16 = vector.shape_cast %15 : vector<32xf32> to vector<32x1xf32>
    %cst_10 = arith.constant 6.400000e+01 : f32
    %17 = vector.broadcast %cst_10 : f32 to vector<32x1xf32>
    %18 = arith.divf %16, %17 : vector<32x1xf32>
    %19 = vector.broadcast %11 : vector<32x1xf32> to vector<32x64xf32>
    %20 = arith.subf %3, %19 : vector<32x64xf32>
    %cst_11 = arith.constant 9.99999974E-6 : f32
    %21 = vector.broadcast %cst_11 : f32 to vector<32x1xf32>
    %22 = arith.addf %18, %21 : vector<32x1xf32>
    %23 = math.rsqrt %22 : vector<32x1xf32>
    %24 = vector.broadcast %23 : vector<32x1xf32> to vector<32x64xf32>
    %25 = arith.mulf %20, %24 : vector<32x64xf32>
    %26 = vector.broadcast %5 : vector<1x64xf32> to vector<32x64xf32>
    %27 = arith.mulf %25, %26 : vector<32x64xf32>
    %28 = vector.broadcast %7 : vector<1x64xf32> to vector<32x64xf32>
    %29 = arith.addf %27, %28 : vector<32x64xf32>
    %c0_12 = arith.constant 0 : index
    %c0_13 = arith.constant 0 : index
    %c0_14 = arith.constant 0 : index
    %30 = vector.load %arg5[%c0_12, %c0_13, %c0_14] : memref<1x64x192xf32, #tpu.memory_space<vmem>>, vector<1x64x192xf32>
    %31 = vector.shape_cast %30 : vector<1x64x192xf32> to vector<64x192xf32>
    %cst_15 = arith.constant dense<0.000000e+00> : vector<32x192xf32>
    %32 = tpu.matmul %29, %31, %cst_15 {dimension_numbers = #tpu.dot_dimension_numbers<[1], [0], [0], [1], [0, 0, 1, 1], [], []>} : vector<32x64xf32>, vector<64x192xf32>, vector<32x192xf32> -> vector<32x192xf32>
    %33 = vector.extract_strided_slice %32 {offsets = [0, 0], sizes = [32, 64], strides = [1, 1]} : vector<32x192xf32> to vector<32x64xf32>
    %34 = vector.extract_strided_slice %32 {offsets = [0, 64], sizes = [32, 64], strides = [1, 1]} : vector<32x192xf32> to vector<32x64xf32>
    %35 = vector.extract_strided_slice %32 {offsets = [0, 128], sizes = [32, 64], strides = [1, 1]} : vector<32x192xf32> to vector<32x64xf32>
    %c0_16 = arith.constant 0 : index
    %c0_17 = arith.constant 0 : index
    %c0_18 = arith.constant 0 : index
    %36 = vector.load %arg6[%c0_16, %c0_17, %c0_18] : memref<1x64x64xf32, #tpu.memory_space<vmem>>, vector<1x64x64xf32>
    %37 = vector.shape_cast %36 : vector<1x64x64xf32> to vector<64x64xf32>
    %cst_19 = arith.constant 0.000000e+00 : f32
    %38 = vector.broadcast %cst_19 : f32 to vector<32x64xf32>
    %39 = vector.extract_strided_slice %33 {offsets = [0, 0], sizes = [32, 32], strides = [1, 1]} : vector<32x64xf32> to vector<32x32xf32>
    %40 = vector.extract_strided_slice %34 {offsets = [0, 0], sizes = [32, 32], strides = [1, 1]} : vector<32x64xf32> to vector<32x32xf32>
    %41 = vector.extract_strided_slice %35 {offsets = [0, 0], sizes = [32, 32], strides = [1, 1]} : vector<32x64xf32> to vector<32x32xf32>
    %cst_20 = arith.constant dense<0.000000e+00> : vector<32x32xf32>
    %42 = tpu.matmul %39, %40, %cst_20 {dimension_numbers = #tpu.dot_dimension_numbers<[1], [1], [0], [0], [0, 0, 1, 0], [], []>} : vector<32x32xf32>, vector<32x32xf32>, vector<32x32xf32> -> vector<32x32xf32>
    %cst_21 = arith.constant 0.176776692 : f32
    %43 = vector.broadcast %cst_21 : f32 to vector<32x32xf32>
    %44 = arith.mulf %42, %43 : vector<32x32xf32>
    %cst_22 = arith.constant dense<0xFF800000> : vector<32xf32>
    %45 = vector.multi_reduction <maximumf>, %44, %cst_22 [1] : vector<32x32xf32> to vector<32xf32>
    %46 = vector.shape_cast %45 : vector<32xf32> to vector<32x1xf32>
    %47 = vector.broadcast %46 : vector<32x1xf32> to vector<32x32xf32>
    %48 = arith.subf %44, %47 : vector<32x32xf32>
    %49 = math.exp %48 : vector<32x32xf32>
    %cst_23 = arith.constant dense<0.000000e+00> : vector<32xf32>
    %50 = vector.multi_reduction <add>, %49, %cst_23 [1] : vector<32x32xf32> to vector<32xf32>
    %51 = vector.shape_cast %50 : vector<32xf32> to vector<32x1xf32>
    %cst_24 = arith.constant 1.000000e+00 : f32
    %52 = vector.broadcast %cst_24 : f32 to vector<32x1xf32>
    %53 = arith.divf %52, %51 : vector<32x1xf32>
    %54 = vector.broadcast %53 : vector<32x1xf32> to vector<32x32xf32>
    %55 = arith.mulf %49, %54 : vector<32x32xf32>
    %c0_25 = arith.constant 0 : index
    %c0_26 = arith.constant 0 : index
    %c0_27 = arith.constant 0 : index
    %c0_28 = arith.constant 0 : index
    %56 = vector.load %arg17[%c0_25, %c0_26, %c0_27, %c0_28] : memref<1x1x32x64xf32, #tpu.memory_space<vmem>>, vector<1x1x32x32xf32>
    %57 = vector.shape_cast %56 : vector<1x1x32x32xf32> to vector<32x32xf32>
    %58 = vector.shape_cast %55 : vector<32x32xf32> to vector<1x1x32x32xf32>
    tpu.vector_store %arg17[%c0_25, %c0_26, %c0_27, %c0_28], %58 {strides = array<i32>} : memref<1x1x32x64xf32, #tpu.memory_space<vmem>>, vector<1x1x32x32xf32>,
    %cst_29 = arith.constant dense<0.000000e+00> : vector<32x32xf32>
    %59 = tpu.matmul %55, %41, %cst_29 {dimension_numbers = #tpu.dot_dimension_numbers<[1], [0], [0], [1], [0, 0, 1, 1], [], []>} : vector<32x32xf32>, vector<32x32xf32>, vector<32x32xf32> -> vector<32x32xf32>
    %60 = vector.extract_strided_slice %37 {offsets = [0, 0], sizes = [32, 64], strides = [1, 1]} : vector<64x64xf32> to vector<32x64xf32>
    %cst_30 = arith.constant dense<0.000000e+00> : vector<32x64xf32>
    %61 = tpu.matmul %59, %60, %cst_30 {dimension_numbers = #tpu.dot_dimension_numbers<[1], [0], [0], [1], [0, 0, 1, 1], [], []>} : vector<32x32xf32>, vector<32x64xf32>, vector<32x64xf32> -> vector<32x64xf32>
    %62 = arith.addf %38, %61 : vector<32x64xf32>
    %63 = vector.extract_strided_slice %33 {offsets = [0, 32], sizes = [32, 32], strides = [1, 1]} : vector<32x64xf32> to vector<32x32xf32>
    %64 = vector.extract_strided_slice %34 {offsets = [0, 32], sizes = [32, 32], strides = [1, 1]} : vector<32x64xf32> to vector<32x32xf32>
    %65 = vector.extract_strided_slice %35 {offsets = [0, 32], sizes = [32, 32], strides = [1, 1]} : vector<32x64xf32> to vector<32x32xf32>
    %cst_31 = arith.constant dense<0.000000e+00> : vector<32x32xf32>
    %66 = tpu.matmul %63, %64, %cst_31 {dimension_numbers = #tpu.dot_dimension_numbers<[1], [1], [0], [0], [0, 0, 1, 0], [], []>} : vector<32x32xf32>, vector<32x32xf32>, vector<32x32xf32> -> vector<32x32xf32>
    %cst_32 = arith.constant 0.176776692 : f32
    %67 = vector.broadcast %cst_32 : f32 to vector<32x32xf32>
    %68 = arith.mulf %66, %67 : vector<32x32xf32>
    %cst_33 = arith.constant dense<0xFF800000> : vector<32xf32>
    %69 = vector.multi_reduction <maximumf>, %68, %cst_33 [1] : vector<32x32xf32> to vector<32xf32>
    %70 = vector.shape_cast %69 : vector<32xf32> to vector<32x1xf32>
    %71 = vector.broadcast %70 : vector<32x1xf32> to vector<32x32xf32>
    %72 = arith.subf %68, %71 : vector<32x32xf32>
    %73 = math.exp %72 : vector<32x32xf32>
    %cst_34 = arith.constant dense<0.000000e+00> : vector<32xf32>
    %74 = vector.multi_reduction <add>, %73, %cst_34 [1] : vector<32x32xf32> to vector<32xf32>
    %75 = vector.shape_cast %74 : vector<32xf32> to vector<32x1xf32>
    %cst_35 = arith.constant 1.000000e+00 : f32
    %76 = vector.broadcast %cst_35 : f32 to vector<32x1xf32>
    %77 = arith.divf %76, %75 : vector<32x1xf32>
    %78 = vector.broadcast %77 : vector<32x1xf32> to vector<32x32xf32>
    %79 = arith.mulf %73, %78 : vector<32x32xf32>
    %c0_36 = arith.constant 0 : index
    %c0_37 = arith.constant 0 : index
    %c0_38 = arith.constant 0 : index
    %c32 = arith.constant 32 : index
    %80 = vector.load %arg17[%c0_36, %c0_37, %c0_38, %c32] : memref<1x1x32x64xf32, #tpu.memory_space<vmem>>, vector<1x1x32x32xf32>
    %81 = vector.shape_cast %80 : vector<1x1x32x32xf32> to vector<32x32xf32>
    %82 = vector.shape_cast %79 : vector<32x32xf32> to vector<1x1x32x32xf32>
    tpu.vector_store %arg17[%c0_36, %c0_37, %c0_38, %c32], %82 {strides = array<i32>} : memref<1x1x32x64xf32, #tpu.memory_space<vmem>>, vector<1x1x32x32xf32>,
    %cst_39 = arith.constant dense<0.000000e+00> : vector<32x32xf32>
    %83 = tpu.matmul %79, %65, %cst_39 {dimension_numbers = #tpu.dot_dimension_numbers<[1], [0], [0], [1], [0, 0, 1, 1], [], []>} : vector<32x32xf32>, vector<32x32xf32>, vector<32x32xf32> -> vector<32x32xf32>
    %84 = vector.extract_strided_slice %37 {offsets = [32, 0], sizes = [32, 64], strides = [1, 1]} : vector<64x64xf32> to vector<32x64xf32>
    %cst_40 = arith.constant dense<0.000000e+00> : vector<32x64xf32>
    %85 = tpu.matmul %83, %84, %cst_40 {dimension_numbers = #tpu.dot_dimension_numbers<[1], [0], [0], [1], [0, 0, 1, 1], [], []>} : vector<32x32xf32>, vector<32x64xf32>, vector<32x64xf32> -> vector<32x64xf32>
    %86 = arith.addf %62, %85 : vector<32x64xf32>
    %87 = arith.addf %3, %86 : vector<32x64xf32>
    %c0_41 = arith.constant 0 : index
    %c0_42 = arith.constant 0 : index
    %c0_43 = arith.constant 0 : index
    %88 = vector.load %arg7[%c0_41, %c0_42, %c0_43] : memref<1x1x64xf32, #tpu.memory_space<vmem>>, vector<1x1x64xf32>
    %89 = vector.shape_cast %88 : vector<1x1x64xf32> to vector<1x64xf32>
    %90 = vector.broadcast %89 : vector<1x64xf32> to vector<32x64xf32>
    %91 = arith.addf %87, %90 : vector<32x64xf32>
    %c0_44 = arith.constant 0 : index
    %c0_45 = arith.constant 0 : index
    %c0_46 = arith.constant 0 : index
    %92 = vector.load %arg8[%c0_44, %c0_45, %c0_46] : memref<1x1x64xf32, #tpu.memory_space<vmem>>, vector<1x1x64xf32>
    %93 = vector.shape_cast %92 : vector<1x1x64xf32> to vector<1x64xf32>
    %c0_47 = arith.constant 0 : index
    %c0_48 = arith.constant 0 : index
    %c0_49 = arith.constant 0 : index
    %94 = vector.load %arg9[%c0_47, %c0_48, %c0_49] : memref<1x1x64xf32, #tpu.memory_space<vmem>>, vector<1x1x64xf32>
    %95 = vector.shape_cast %94 : vector<1x1x64xf32> to vector<1x64xf32>
    %cst_50 = arith.constant dense<0.000000e+00> : vector<32xf32>
    %96 = vector.multi_reduction <add>, %91, %cst_50 [1] : vector<32x64xf32> to vector<32xf32>
    %97 = vector.shape_cast %96 : vector<32xf32> to vector<32x1xf32>
    %cst_51 = arith.constant 6.400000e+01 : f32
    %98 = vector.broadcast %cst_51 : f32 to vector<32x1xf32>
    %99 = arith.divf %97, %98 : vector<32x1xf32>
    %100 = vector.broadcast %99 : vector<32x1xf32> to vector<32x64xf32>
    %101 = arith.subf %91, %100 : vector<32x64xf32>
    %102 = arith.mulf %101, %101 : vector<32x64xf32>
    %cst_52 = arith.constant dense<0.000000e+00> : vector<32xf32>
    %103 = vector.multi_reduction <add>, %102, %cst_52 [1] : vector<32x64xf32> to vector<32xf32>
    %104 = vector.shape_cast %103 : vector<32xf32> to vector<32x1xf32>
    %cst_53 = arith.constant 6.400000e+01 : f32
    %105 = vector.broadcast %cst_53 : f32 to vector<32x1xf32>
    %106 = arith.divf %104, %105 : vector<32x1xf32>
    %107 = vector.broadcast %99 : vector<32x1xf32> to vector<32x64xf32>
    %108 = arith.subf %91, %107 : vector<32x64xf32>
    %cst_54 = arith.constant 9.99999974E-6 : f32
    %109 = vector.broadcast %cst_54 : f32 to vector<32x1xf32>
    %110 = arith.addf %106, %109 : vector<32x1xf32>
    %111 = math.rsqrt %110 : vector<32x1xf32>
    %112 = vector.broadcast %111 : vector<32x1xf32> to vector<32x64xf32>
    %113 = arith.mulf %108, %112 : vector<32x64xf32>
    %114 = vector.broadcast %93 : vector<1x64xf32> to vector<32x64xf32>
    %115 = arith.mulf %113, %114 : vector<32x64xf32>
    %116 = vector.broadcast %95 : vector<1x64xf32> to vector<32x64xf32>
    %117 = arith.addf %115, %116 : vector<32x64xf32>
    %c0_55 = arith.constant 0 : index
    %c0_56 = arith.constant 0 : index
    %c0_57 = arith.constant 0 : index
    %118 = vector.load %arg10[%c0_55, %c0_56, %c0_57] : memref<1x64x256xf32, #tpu.memory_space<vmem>>, vector<1x64x256xf32>
    %119 = vector.shape_cast %118 : vector<1x64x256xf32> to vector<64x256xf32>
    %cst_58 = arith.constant dense<0.000000e+00> : vector<32x256xf32>
    %120 = tpu.matmul %117, %119, %cst_58 {dimension_numbers = #tpu.dot_dimension_numbers<[1], [0], [0], [1], [0, 0, 1, 1], [], []>} : vector<32x64xf32>, vector<64x256xf32>, vector<32x256xf32> -> vector<32x256xf32>
    %c0_59 = arith.constant 0 : index
    %c0_60 = arith.constant 0 : index
    %c0_61 = arith.constant 0 : index
    %121 = vector.load %arg11[%c0_59, %c0_60, %c0_61] : memref<1x1x256xf32, #tpu.memory_space<vmem>>, vector<1x1x256xf32>
    %122 = vector.shape_cast %121 : vector<1x1x256xf32> to vector<1x256xf32>
    %123 = vector.broadcast %122 : vector<1x256xf32> to vector<32x256xf32>
    %124 = arith.addf %120, %123 : vector<32x256xf32>
    %cst_62 = arith.constant 0.000000e+00 : f32
    %125 = vector.broadcast %cst_62 : f32 to vector<32x256xf32>
    %126 = arith.maximumf %124, %125 : vector<32x256xf32>
    %c0_63 = arith.constant 0 : index
    %c0_64 = arith.constant 0 : index
    %c0_65 = arith.constant 0 : index
    %127 = vector.load %arg12[%c0_63, %c0_64, %c0_65] : memref<1x256x64xf32, #tpu.memory_space<vmem>>, vector<1x256x64xf32>
    %128 = vector.shape_cast %127 : vector<1x256x64xf32> to vector<256x64xf32>
    %cst_66 = arith.constant dense<0.000000e+00> : vector<32x64xf32>
    %129 = tpu.matmul %126, %128, %cst_66 {dimension_numbers = #tpu.dot_dimension_numbers<[1], [0], [0], [1], [0, 0, 1, 1], [], []>} : vector<32x256xf32>, vector<256x64xf32>, vector<32x64xf32> -> vector<32x64xf32>
    %c0_67 = arith.constant 0 : index
    %c0_68 = arith.constant 0 : index
    %c0_69 = arith.constant 0 : index
    %130 = vector.load %arg13[%c0_67, %c0_68, %c0_69] : memref<1x1x64xf32, #tpu.memory_space<vmem>>, vector<1x1x64xf32>
    %131 = vector.shape_cast %130 : vector<1x1x64xf32> to vector<1x64xf32>
    %132 = vector.broadcast %131 : vector<1x64xf32> to vector<32x64xf32>
    %133 = arith.addf %129, %132 : vector<32x64xf32>
    %134 = arith.addf %91, %133 : vector<32x64xf32>
    %c0_70 = arith.constant 0 : index
    %c0_71 = arith.constant 0 : index
    %135 = vector.load %arg18[%c0_70, %c0_71] : memref<32x64xf32, #tpu.memory_space<vmem>>, vector<32x64xf32>
    tpu.vector_store %arg18[%c0_70, %c0_71], %134 {strides = array<i32>} : memref<32x64xf32, #tpu.memory_space<vmem>>, vector<32x64xf32>,
    %c3_i32 = arith.constant 3 : i32
    %136 = arith.cmpi eq, %arg1, %c3_i32 : i32
    %137 = arith.extui %136 : i1 to i32
    %c0_i32_72 = arith.constant 0 : i32
    %138 = arith.cmpi ne, %137, %c0_i32_72 : i32
    scf.if %138 {
      %c0_73 = arith.constant 0 : index
      %c0_74 = arith.constant 0 : index
      %139 = vector.load %arg14[%c0_73, %c0_74] : memref<1x64xf32, #tpu.memory_space<vmem>>, vector<1x64xf32>
      %c0_75 = arith.constant 0 : index
      %c0_76 = arith.constant 0 : index
      %140 = vector.load %arg15[%c0_75, %c0_76] : memref<1x64xf32, #tpu.memory_space<vmem>>, vector<1x64xf32>
      %cst_77 = arith.constant dense<0.000000e+00> : vector<32xf32>
      %141 = vector.multi_reduction <add>, %134, %cst_77 [1] : vector<32x64xf32> to vector<32xf32>
      %142 = vector.shape_cast %141 : vector<32xf32> to vector<32x1xf32>
      %cst_78 = arith.constant 6.400000e+01 : f32
      %143 = vector.broadcast %cst_78 : f32 to vector<32x1xf32>
      %144 = arith.divf %142, %143 : vector<32x1xf32>
      %145 = vector.broadcast %144 : vector<32x1xf32> to vector<32x64xf32>
      %146 = arith.subf %134, %145 : vector<32x64xf32>
      %147 = arith.mulf %146, %146 : vector<32x64xf32>
      %cst_79 = arith.constant dense<0.000000e+00> : vector<32xf32>
      %148 = vector.multi_reduction <add>, %147, %cst_79 [1] : vector<32x64xf32> to vector<32xf32>
      %149 = vector.shape_cast %148 : vector<32xf32> to vector<32x1xf32>
      %cst_80 = arith.constant 6.400000e+01 : f32
      %150 = vector.broadcast %cst_80 : f32 to vector<32x1xf32>
      %151 = arith.divf %149, %150 : vector<32x1xf32>
      %152 = vector.broadcast %144 : vector<32x1xf32> to vector<32x64xf32>
      %153 = arith.subf %134, %152 : vector<32x64xf32>
      %cst_81 = arith.constant 9.99999974E-6 : f32
      %154 = vector.broadcast %cst_81 : f32 to vector<32x1xf32>
      %155 = arith.addf %151, %154 : vector<32x1xf32>
      %156 = math.rsqrt %155 : vector<32x1xf32>
      %157 = vector.broadcast %156 : vector<32x1xf32> to vector<32x64xf32>
      %158 = arith.mulf %153, %157 : vector<32x64xf32>
      %159 = vector.broadcast %139 : vector<1x64xf32> to vector<32x64xf32>
      %160 = arith.mulf %158, %159 : vector<32x64xf32>
      %161 = vector.broadcast %140 : vector<1x64xf32> to vector<32x64xf32>
      %162 = arith.addf %160, %161 : vector<32x64xf32>
      %c0_82 = arith.constant 0 : index
      %c0_83 = arith.constant 0 : index
      %c0_84 = arith.constant 0 : index
      %163 = vector.load %arg16[%c0_82, %c0_83, %c0_84] : memref<1x32x64xf32, #tpu.memory_space<vmem>>, vector<1x32x64xf32>
      %164 = vector.shape_cast %163 : vector<1x32x64xf32> to vector<32x64xf32>
      %165 = vector.shape_cast %162 : vector<32x64xf32> to vector<1x32x64xf32>
      tpu.vector_store %arg16[%c0_82, %c0_83, %c0_84], %165 {strides = array<i32>} : memref<1x32x64xf32, #tpu.memory_space<vmem>>, vector<1x32x64xf32>,
    } else {
    }
    return
  }
  func.func @transform_0(%arg0: i32, %arg1: i32) -> (i32, i32, i32) {
    %c0_i32 = arith.constant 0 : i32
    %c0_i32_0 = arith.constant 0 : i32
    %c0_i32_1 = arith.constant 0 : i32
    return %arg0, %c0_i32, %c0_i32_0 : i32, i32, i32
  }
  func.func @transform_1(%arg0: i32, %arg1: i32) -> (i32, i32, i32) {
    %c0_i32 = arith.constant 0 : i32
    %c0_i32_0 = arith.constant 0 : i32
    %c0_i32_1 = arith.constant 0 : i32
    return %arg1, %c0_i32, %c0_i32_0 : i32, i32, i32
  }
  func.func @transform_2(%arg0: i32, %arg1: i32) -> (i32, i32, i32) {
    %c0_i32 = arith.constant 0 : i32
    %c0_i32_0 = arith.constant 0 : i32
    %c0_i32_1 = arith.constant 0 : i32
    return %arg1, %c0_i32, %c0_i32_0 : i32, i32, i32
  }
  func.func @transform_3(%arg0: i32, %arg1: i32) -> (i32, i32, i32) {
    %c0_i32 = arith.constant 0 : i32
    %c0_i32_0 = arith.constant 0 : i32
    %c0_i32_1 = arith.constant 0 : i32
    return %arg1, %c0_i32, %c0_i32_0 : i32, i32, i32
  }
  func.func @transform_4(%arg0: i32, %arg1: i32) -> (i32, i32, i32) {
    %c0_i32 = arith.constant 0 : i32
    %c0_i32_0 = arith.constant 0 : i32
    %c0_i32_1 = arith.constant 0 : i32
    return %arg1, %c0_i32, %c0_i32_0 : i32, i32, i32
  }
  func.func @transform_5(%arg0: i32, %arg1: i32) -> (i32, i32, i32) {
    %c0_i32 = arith.constant 0 : i32
    %c0_i32_0 = arith.constant 0 : i32
    %c0_i32_1 = arith.constant 0 : i32
    return %arg1, %c0_i32, %c0_i32_0 : i32, i32, i32
  }
  func.func @transform_6(%arg0: i32, %arg1: i32) -> (i32, i32, i32) {
    %c0_i32 = arith.constant 0 : i32
    %c0_i32_0 = arith.constant 0 : i32
    %c0_i32_1 = arith.constant 0 : i32
    return %arg1, %c0_i32, %c0_i32_0 : i32, i32, i32
  }
  func.func @transform_7(%arg0: i32, %arg1: i32) -> (i32, i32, i32) {
    %c0_i32 = arith.constant 0 : i32
    %c0_i32_0 = arith.constant 0 : i32
    %c0_i32_1 = arith.constant 0 : i32
    return %arg1, %c0_i32, %c0_i32_0 : i32, i32, i32
  }
  func.func @transform_8(%arg0: i32, %arg1: i32) -> (i32, i32, i32) {
    %c0_i32 = arith.constant 0 : i32
    %c0_i32_0 = arith.constant 0 : i32
    %c0_i32_1 = arith.constant 0 : i32
    return %arg1, %c0_i32, %c0_i32_0 : i32, i32, i32
  }
  func.func @transform_9(%arg0: i32, %arg1: i32) -> (i32, i32, i32) {
    %c0_i32 = arith.constant 0 : i32
    %c0_i32_0 = arith.constant 0 : i32
    %c0_i32_1 = arith.constant 0 : i32
    return %arg1, %c0_i32, %c0_i32_0 : i32, i32, i32
  }
  func.func @transform_10(%arg0: i32, %arg1: i32) -> (i32, i32, i32) {
    %c0_i32 = arith.constant 0 : i32
    %c0_i32_0 = arith.constant 0 : i32
    %c0_i32_1 = arith.constant 0 : i32
    return %arg1, %c0_i32, %c0_i32_0 : i32, i32, i32
  }
  func.func @transform_11(%arg0: i32, %arg1: i32) -> (i32, i32, i32) {
    %c0_i32 = arith.constant 0 : i32
    %c0_i32_0 = arith.constant 0 : i32
    %c0_i32_1 = arith.constant 0 : i32
    return %arg1, %c0_i32, %c0_i32_0 : i32, i32, i32
  }
  func.func @transform_12(%arg0: i32, %arg1: i32) -> (i32, i32) {
    %c0_i32 = arith.constant 0 : i32
    %c0_i32_0 = arith.constant 0 : i32
    %c0_i32_1 = arith.constant 0 : i32
    return %c0_i32, %c0_i32_0 : i32, i32
  }
  func.func @transform_13(%arg0: i32, %arg1: i32) -> (i32, i32) {
    %c0_i32 = arith.constant 0 : i32
    %c0_i32_0 = arith.constant 0 : i32
    %c0_i32_1 = arith.constant 0 : i32
    return %c0_i32, %c0_i32_0 : i32, i32
  }
  func.func @transform_14(%arg0: i32, %arg1: i32) -> (i32, i32, i32) {
    %c0_i32 = arith.constant 0 : i32
    %c0_i32_0 = arith.constant 0 : i32
    %c0_i32_1 = arith.constant 0 : i32
    return %arg0, %c0_i32, %c0_i32_0 : i32, i32, i32
  }
  func.func @transform_15(%arg0: i32, %arg1: i32) -> (i32, i32, i32, i32) {
    %c0_i32 = arith.constant 0 : i32
    %c0_i32_0 = arith.constant 0 : i32
    %c0_i32_1 = arith.constant 0 : i32
    return %arg0, %arg1, %c0_i32, %c0_i32_0 : i32, i32, i32, i32
  }
}

</mosaic_0001>

<bundles_post_ra>
// kernel: tpu_custom_call.1
= control target key start
LH: loop header
LB: loop body
LE: loop exit
PB: predicated region body
PF: predicated region fallthrough
CT: control target
= control target key end

     0   :  { %s3877_s0 = inlined_call_operand.vmem [shape: f32[2,32,64], index: 0, kind: input, shape index: {}]   ;;  %s3878_s1 = inlined_call_operand.vmem [shape: f32[4,1,64], index: 1, kind: input, shape index: {}]   ;;  %s3879_s2 = inlined_call_operand.vmem [shape: f32[4,1,64], index: 2, kind: input, shape index: {}]   ;;  %s3880_s3 = inlined_call_operand.vmem [shape: f32[4,64,192], index: 3, kind: input, shape index: {}]   ;;  %s3881_s4 = inlined_call_operand.vmem [shape: f32[4,64,64], index: 4, kind: input, shape index: {}]   ;;  %s3882_s5 = inlined_call_operand.vmem [shape: f32[4,1,64], index: 5, kind: input, shape index: {}]   ;;  %s3883_s6 = inlined_call_operand.vmem [shape: f32[4,1,64], index: 6, kind: input, shape index: {}]   ;;  %s3884_s7 = inlined_call_operand.vmem [shape: f32[4,1,64], index: 7, kind: input, shape index: {}]   ;;  %s3885_s8 = inlined_call_operand.vmem [shape: f32[4,64,256], index: 8, kind: input, shape index: {}]   ;;  %s3886_s9 = inlined_call_operand.vmem [shape: f32[4,1,256], index: 9, kind: input, shape index: {}]   ;;  %s3887_s10 = inlined_call_operand.vmem [shape: f32[4,256,64], index: 10, kind: input, shape index: {}]   ;;  %s3888_s11 = inlined_call_operand.vmem [shape: f32[4,1,64], index: 11, kind: input, shape index: {}]   ;;  %s3889_s12 = inlined_call_operand.vmem [shape: f32[1,64], index: 12, kind: input, shape index: {}]   ;;  %s3890_s13 = inlined_call_operand.vmem [shape: f32[1,64], index: 13, kind: input, shape index: {}]   ;;  %s3891_s14 = inlined_call_operand.hbm [shape: f32[2,32,64], index: 14, kind: output, shape index: {0}]   ;;  %s3892_s15 = inlined_call_operand.hbm [shape: f32[2,4,32,64], index: 15, kind: output, shape index: {1}]  }
   0x1   :  { %3917 = sst [smem:[#allocation27_spill]] %s3877_s0 }
   0x2   :  { %3918 = sst [smem:[#allocation28_spill]] %s3880_s3 }
   0x3   :  { %3919 = sst [smem:[#allocation29_spill]] %s3881_s4 }
   0x4   :  { %3920 = sst [smem:[#allocation30_spill]] %s3884_s7 }
   0x5   :  { %3921 = sst [smem:[#allocation31_spill]] %s3886_s9 }
   0x6   :  { %3922 = sst [smem:[#allocation32_spill]] %s3887_s10 }
   0x7   :  { %3923 = sst [smem:[#allocation33_spill]] %s3888_s11 }
   0x8   :  { %3924 = sst [smem:[#allocation34_spill]] %s3889_s12 }
   0x9   :  { %3925 = sst [smem:[#allocation35_spill]] %s3890_s13 }
   0xa   :  { %3926 = sst [smem:[#allocation36_spill]] %s3891_s14 }
   0xb   :  { %3927 = sst [smem:[#allocation37_spill]] %s3892_s15 }
   0xc   :  { %21 = vsyncpa [#allocation4], 0 }
   0xd   :  { %23 = vsyncpa [#allocation4 + $0x1], 0 }
   0xe   :  { %24 = vsyncpa [#allocation6], 0 }
   0xf   :  { %26 = vsyncpa [#allocation6 + $0x1], 0  ;;  %s3191_s18 = smov 0   ;;  %s3193_s19 = smov 0  }
  0x10   :  { %s3195_s20 = smov 0   ;;  %s3197_s21 = smov 0  }
  0x11   :  { %s3199_s22 = smov 0   ;;  %s3201_s23 = smov 0  }
  0x12   :  { %s3203_s24 = smov 0   ;;  %s3205_s25 = smov 0  }
  0x13   :  { %s3207_s26 = smov 0   ;;  %s3209_s27 = smov 0  }
  0x14   :  { %s3211_s28 = smov 0  }
  0x15 LB: > { %3928 = sst [smem:[#allocation9_spill]] %s3061_s18  ;;  %s2376_s29 = sadd.s32 4294967295, %s3101_s28   ;;  %s3101_s28 = sphi %s3211_s28, %s32_s28   ;;  %s3097_s27 = sphi %s3209_s27, %s3994_s27   ;;  %s3093_s26 = sphi %s3207_s26, %s3993_s26   ;;  %s3089_s25 = sphi %s3205_s25, %s3992_s25   ;;  %s3085_s24 = sphi %s3203_s24, %s3991_s24   ;;  %s3081_s23 = sphi %s3201_s23, %s3990_s23   ;;  %s3077_s22 = sphi %s3199_s22, %s3989_s22   ;;  %s3073_s21 = sphi %s3197_s21, %s3988_s21   ;;  %s3069_s20 = sphi %s3195_s20, %s3987_s20   ;;  %s3065_s19 = sphi %s3193_s19, %s3986_s19   ;;  %s3061_s18 = sphi %s3191_s18, %s3985_s18  }
  0x16   : > { %3929 = sst [smem:[#allocation10_spill]] %s3065_s19  ;;  %s2377_s30 = sadd.s32 4294967294, %s3101_s28  }
  0x17   : > { %3930 = sst [smem:[#allocation11_spill]] %s3069_s20  ;;  %s41_s16 = sadd.s32 1, %s3093_s26 }
  0x18   : > { %3931 = sst [smem:[#allocation12_spill]] %s3073_s21  ;;  %s44_s17 = sadd.s32 1, %s3097_s27 }
  0x19   : > { %3932 = sst [smem:[#allocation13_spill]] %s3077_s22  ;;  %p42_p0 = scmp.ge.s32.totalorder %s41_s16, 4 }
  0x1a   : > { %3933 = sst [smem:[#allocation14_spill]] %s3081_s23  ;;  %s405_s15 = sadd.s32 1, %s3081_s23 }
  0x1b   : > { %3934 = sst [smem:[#allocation15_spill]] %s3089_s25  ;;  %p415_p1 = scmp.ne.s32.totalorder %s3081_s23, %s3077_s22 }
  0x1c   : > { %3935 = sst [smem:[#allocation16_spill]] %s3093_s26  ;;  %p3253_p2 = scmp.eq.s32.totalorder %s2376_s29, 7 }
  0x1d   : > { %3936 = sst [smem:[#allocation17_spill]] %s3097_s27  ;;  %s3996_s16 = smov (%p42_p0, %s41_s16), 0 }
  0x1e   : > { %3937 = sst [smem:[#allocation18_spill]] %s3101_s28  ;;  %s3998_s17 = smov (!%p42_p0, %s44_s17), %s3097_s27 }
  0x1f   : > { %3939 = sst [smem:[#allocation19_spill]] %s3996_s16  ;;  %p3262_p3 = por %p3253_p2, %p415_p1 }
  0x20   : > { %p421_p4 = scmp.ne.s32.totalorder %s3077_s22, %s3073_s21  ;;  %p46_p5 = scmp.ge.s32.totalorder %s3998_s17, 2 }
  0x21   : > { %s3940_s13 = scalar_select %p3262_p3, 1, 0 }
  0x22   : > { %p3268_p6 = scmp.eq.s32.totalorder %s2377_s30, 7  ;;  %s429_s12 = ssub.s32 %s3093_s26, %s3996_s16 }
  0x23   : > { %3941 = sst [smem:[#allocation20_spill]] %s3940_s13  ;;  %s433_s11 = sadd.s32 1, %s3069_s20 }
  0x24   : > { %s4000_s17 = smov (%p46_p5, %s3998_s17), 0  ;;  %p3279_p7 = por %p3268_p6, %p421_p4 }
  0x25   : > { %3943 = sst [smem:[#allocation21_spill]] %s4000_s17  ;;  %p443_p8 = scmp.ne.s32.totalorder %s3069_s20, %s3065_s19 }
  0x26   : > { %s3944_s10 = scalar_select %p3279_p7, 1, 0 }
  0x27   : > { %s402_s21 = ssub.s32 %s3097_s27, %s4000_s17  ;;  %p449_p9 = scmp.ne.s32.totalorder %s3065_s19, %s3061_s18 }
  0x28   : > { %3945 = sst [smem:[#allocation22_spill]] %s3944_s10  ;;  %p403_p10 = scmp.eq.s32.totalorder %s402_s21, 0 }
  0x29   : > { %s430_s30 = sor.u32 %s429_s12, %s402_s21  ;;  %p3291_p12 = por %p443_p8, %p3253_p2 }
  0x2a   : > { %p431_p11 = scmp.eq.s32.totalorder %s430_s30, 0  ;;  %p3303_p13 = por %p449_p9, %p3268_p6 }
  0x2b   : > { %s3946_s13 = scalar_select %p3291_p12, 1, 0 }
  0x2c   : > { %s3296_s16 = scalar_select %p403_p10, %s3081_s23, %s405_s15  }
  0x2d   : > { %3947 = sst [smem:[#allocation23_spill]] %s3946_s13  ;;  %p2380_p0 = scmp.ge.s32.totalorder %s3101_s28, 1 }
  0x2e   : > { %3948 = sst [smem:[#allocation24_spill]] %s3296_s16  ;;  %p557_p1 = scmp.lt.s32.totalorder %s3101_s28, 9 }
  0x2f   : > { %s3299_s26 = scalar_select %p431_p11, %s3069_s20, %s433_s11  }
  0x30   : > { %s3950_s9 = scalar_select %p3303_p13, 1, 0 }
  0x31   : > { %3949 = sst [smem:[#allocation25_spill]] %s3299_s26  ;;  %p558_p4 = pnand %p2380_p0, %p557_p1 }
  0x32   : > { %3951 = sst [smem:[#allocation26_spill]] %s3950_s9  ;;  %s3903_s12 = sand.u32 (!%p558_p4), 1, %s3077_s22  }
  0x33   : > { %561 = sbr.rel (%p558_p4) target bundleno = 2863 (0xb2f), region = 76  ;;  %s3902_s11 = sand.u32 (!%p558_p4), 1, %s3065_s19  }
  0x34   : > { %s2381_s14 = sshll.u32 (!%p558_p4), %s3903_s12, 5  ;;  %s2382_s15 = sshll.u32 (!%p558_p4), %s3902_s11, 5 }
  0x35   : > { %p652_p2 = scmp.lt.s32.totalorder (!%p558_p4), %s3089_s25, 1  ;;  %p657_p5 = scmp.lt.s32.totalorder (!%p558_p4), %s3085_s24, 3 }
  0x36   : > { %s3952_s0 = sld [smem:[#allocation27_spill]] (!%p558_p4)  ;;  %s3953_s3 = sld [smem:[#allocation28_spill]] (!%p558_p4) }
  0x37   : > { %s3954_s4 = sld [smem:[#allocation29_spill]] (!%p558_p4)  ;;  %s3957_s23 = sld [smem:[#allocation32_spill]] (!%p558_p4) }
  0x38   : > { %s3958_s26 = sld [smem:[#allocation33_spill]] (!%p558_p4)  ;;  %s3377_s7 = scalar_lea.vmem (!%p558_p4), [#allocation3], %s2381_s14 }
  0x39   : > { %p2394_p6 = scmp.ne.s32.totalorder (!%p558_p4), %s3085_s24, 0 }
  0x3a   : > { %s653_s21 = scalar_select %p652_p2, %s3089_s25, 1 }
  0x3b   : > { %s3319_s29 = scalar_select %p657_p5, %s3085_s24, 3 }
  0x3c   : > { %s2453_s30 = sshll.u32 %s653_s21, 5  ;;  %vm707_vm0 = vcmask (!%p2394_p6), 523264  }
  0x3d   : > { %s656_s11 = scalar_lea.vmem %s3952_s0, %s2453_s30  ;;  %s2454_s18 = sshll.u32 %s3319_s29, 7 }
  0x3e   : > { %s3336_s13 = scalar_lea.vmem %s3953_s3, %s2454_s18  ;;  %s2455_s21 = sshll.u32 %s3319_s29, 6  ;;  %v703_v0 = vld [vmem:[%s656_s11] sm:$0xff] (!%p2394_p6)  ;;  %v704_v1 = vld [vmem:[%s656_s11 + $0x8] sm:$0xff] (!%p2394_p6)  ;;  %v705_v2 = vld [vmem:[%s656_s11 + $0x10] sm:$0xff] (!%p2394_p6) }
  0x3f   : > { %s3342_s27 = scalar_lea.vmem %s3954_s4, %s2455_s21  ;;  %s3359_s3 = scalar_lea.vmem %s3885_s8, %s2454_s18  ;;  %708 = vst.msk [vmem:[#allocation2] sm:$0xff] (!%p2394_p6), %vm707_vm0, %v703_v0  ;;  %709 = vst.msk [vmem:[#allocation2 + $0x8] sm:$0xff] (!%p2394_p6), %vm707_vm0, %v704_v1  ;;  %v706_v3 = vld [vmem:[%s656_s11 + $0x18] sm:$0xff] (!%p2394_p6) }
  0x40   : > { %s2391_s19 = sshll.u32 %s3319_s29, 1  ;;  %s3956_s4 = sld [smem:[#allocation31_spill]]  ;;  %710 = vst.msk [vmem:[#allocation2 + $0x10] sm:$0xff] (!%p2394_p6), %vm707_vm0, %v705_v2  ;;  %711 = vst.msk [vmem:[#allocation2 + $0x18] sm:$0xff] (!%p2394_p6), %vm707_vm0, %v706_v3 }
  0x41   : > { %s2457_s17 = sshll.u32 %s3319_s29, 8  ;;  %s698_s10 = scalar_lea.vmem %s3958_s26, %s3319_s29 }
  0x42   : > { %s3371_s12 = scalar_lea.vmem %s3957_s23, %s2457_s17  ;;  %s3379_s0 = scalar_lea.vmem [#allocation5], %s2382_s15 }
  0x43   : > { %702 = sbr.rel (%p2394_p6) target bundleno = 74 (0x4a), region = 80 }
  0x46   : > { %s3365_s25 = scalar_lea.vmem %s3956_s4, %s2391_s19 }
  0x4a PF: > { %v3382_v4 = vld [vmem:[#allocation2] sm:$0xff]  ;;  %vm718_vm1 = vcmask 523264   ;;  %v3384_v5 = vld [vmem:[#allocation2 + $0x10] sm:$0xff]  ;;  %v3386_v6 = vld [vmem:[#allocation2 + $0x8] sm:$0xff]  ;;  %v3103_v54 = vmov 0.0   ;;  %s3959_s18 = scalar_lea.vmem %s3878_s1, %s3319_s29  ;;  %s3960_s15 = scalar_lea.vmem %s3879_s2, %s3319_s29  ;;  %vm929_vm2 = vcmask 261120  }
  0x4b   : > { %v719_v7 = vsel %vm718_vm1, %v3382_v4, 0.0  ;;  %v725_v8 = vsel %vm718_vm1, %v3384_v5, 0.0  ;;  %v3392_v9 = vld [vmem:[#allocation2 + $0x18] sm:$0xff]  ;;  %v722_v10 = vsel %vm718_vm1, %v3386_v6, 0.0  ;;  %v793_v32 = vld [vmem:[%s3336_s13 + $0x8] sm:$0xff]  ;;  %v792_v35 = vld [vmem:[%s3336_s13] sm:$0xff]  ;;  %884 = vmatprep.mubr.f32.mxu1 %v3103_v54  ;;  %s3963_s22 = scalar_lea.vmem %s3882_s5, %s3319_s29  ;;  %s3964_s17 = scalar_lea.vmem %s3883_s6, %s3319_s29 }
  0x4c   : > { %720 = vadd.xlane.f32.xlu0 %v719_v7  ;;  %726 = vadd.xlane.f32.xlu1 %v725_v8  ;;  %v728_v11 = vsel %vm718_vm1, %v3392_v9, 0.0  ;;  %v795_v33 = vld [vmem:[%s3336_s13 + $0x18] sm:$0xff]  ;;  %v794_v36 = vld [vmem:[%s3336_s13 + $0x10] sm:$0xff]  ;;  %v797_v38 = vld [vmem:[%s3336_s13 + $0x28] sm:$0xff]  ;;  %s3104_s16 = smov 64   ;;  %s3105_s20 = smov 96  }
  0x4d   : > { %v2635_v34 = vpack.c.bf16 %v795_v33, %v793_v32  ;;  %v2637_v37 = vpack.c.bf16 %v794_v36, %v792_v35  ;;  %v799_v39 = vld [vmem:[%s3336_s13 + $0x38] sm:$0xff]  ;;  %v796_v41 = vld [vmem:[%s3336_s13 + $0x20] sm:$0xff]  ;;  %v798_v42 = vld [vmem:[%s3336_s13 + $0x30] sm:$0xff]  ;;  %s3106_s28 = smov 32   ;;  %vm1369_vm4 = vcmask 523520   ;;  %s3965_s9 = sld [smem:[#allocation30_spill]] }
  0x4e   : > { %v2639_v40 = vpack.c.bf16 %v799_v39, %v797_v38  ;;  %v2641_v43 = vpack.c.bf16 %v798_v42, %v796_v41  ;;  %v801_v44 = vld [vmem:[%s3336_s13 + $0x48] sm:$0xff]  ;;  %v803_v45 = vld [vmem:[%s3336_s13 + $0x58] sm:$0xff]  ;;  %v800_v47 = vld [vmem:[%s3336_s13 + $0x40] sm:$0xff]  ;;  %p2441_p8 = scmp.ne.s32.totalorder %s3085_s24, 3 }
  0x4f   : > { %2636 = vmatprep.subr.bf16.mxu1 %v2635_v34  ;;  %v2643_v46 = vpack.c.bf16 %v803_v45, %v801_v44  ;;  %v802_v48 = vld [vmem:[%s3336_s13 + $0x50] sm:$0xff]  ;;  %v805_v49 = vld [vmem:[%s3336_s13 + $0x68] sm:$0xff]  ;;  %v807_v51 = vld [vmem:[%s3336_s13 + $0x78] sm:$0xff]  ;;  %s3969_s14 = sld [smem:[#allocation35_spill]] (!%p2441_p8) }
  0x50   : > { %723 = vadd.xlane.f32.xlu0 %v722_v10  ;;  %729 = vadd.xlane.f32.xlu1 %v728_v11  ;;  %v2645_v50 = vpack.c.bf16 %v802_v48, %v800_v47  ;;  %v804_v52 = vld [vmem:[%s3336_s13 + $0x60] sm:$0xff]  ;;  %v806_v53 = vld [vmem:[%s3336_s13 + $0x70] sm:$0xff]  ;;  %v2647_v55 = vpack.c.bf16 %v807_v51, %v805_v49  ;;  %vm3485_vm3 = vmpackc.low %vm929_vm2, %vm929_vm2  ;;  %s3968_s13 = sld [smem:[#allocation34_spill]] (!%p2441_p8) }
  0x51   : > { %2638 = vmatpush1.bf16.msra.mxu1 %v2637_v37  ;;  %v2649_v56 = vpack.c.bf16 %v806_v53, %v804_v52  ;;  %v2395_v10 = vld [vmem:[%s3959_s18] ss:$0 sm:$0xff] }
  0x52   : > { %2640 = vmatprep.subr.bf16.mxu1 %v2639_v40 }
  0x53   : > { %s3966_s26 = scalar_lea.vmem %s3965_s9, %s3319_s29 }
  0x55   : > { %2642 = vmatpush1.bf16.msra.mxu1 %v2641_v43 }
  0x56   : > { %2644 = vmatprep.subr.bf16.mxu1 %v2643_v46 }
  0x59   : > { %2646 = vmatpush1.bf16.msra.mxu1 %v2645_v50 }
  0x5a   : > { %2648 = vmatprep.subr.bf16.mxu1 %v2647_v55 }
  0x5d   : > { %2650 = vmatpush1.bf16.msra.mxu1 %v2649_v56 }
  0xd9   : > { %v721_v12 = vpop.xlane.xlu0 %720  ;;  %v727_v13 = vpop.xlane.xlu1 %726 }
  0xda   : > { %v732_v14 = vmul.f32 0.015625, %v721_v12  ;;  %v734_v15 = vmul.f32 0.015625, %v727_v13  ;;  %v2396_v12 = vld [vmem:[%s3960_s15] ss:$0 sm:$0xff] }
  0xdc   : > { %v3399_v16 = vsub.f32 %v3382_v4, %v732_v14  ;;  %v3402_v17 = vsub.f32 %v3384_v5, %v734_v15 }
  0xdd   : > { %v724_v18 = vpop.xlane.xlu0 %723  ;;  %v730_v19 = vpop.xlane.xlu1 %729 }
  0xde   : > { %v733_v20 = vmul.f32 0.015625, %v724_v18  ;;  %v735_v21 = vmul.f32 0.015625, %v730_v19  ;;  %v740_v22 = vmul.f32 %v3399_v16, %v3399_v16  ;;  %v742_v23 = vmul.f32 %v3402_v17, %v3402_v17 }
  0xe0   : > { %v3409_v24 = vsub.f32 %v3386_v6, %v733_v20  ;;  %v3412_v25 = vsub.f32 %v3392_v9, %v735_v21  ;;  %v744_v26 = vsel %vm718_vm1, %v740_v22, 0.0  ;;  %v750_v27 = vsel %vm718_vm1, %v742_v23, 0.0 }
  0xe1   : > { %745 = vadd.xlane.f32.xlu0 %v744_v26 }
  0xe2   : > { %v741_v28 = vmul.f32 %v3409_v24, %v3409_v24  ;;  %v743_v29 = vmul.f32 %v3412_v25, %v3412_v25 }
  0xe4   : > { %v747_v30 = vsel %vm718_vm1, %v741_v28, 0.0  ;;  %v753_v31 = vsel %vm718_vm1, %v743_v29, 0.0 }
  0xe5   : > { %751 = vadd.xlane.f32.xlu0 %v750_v27  ;;  %748 = vadd.xlane.f32.xlu1 %v747_v30 }
  0xe9   : > { %754 = vadd.xlane.f32.xlu1 %v753_v31 }
 0x16e   : > { %v746_v57 = vpop.xlane.xlu0 %745 }
 0x16f   : > { %v756_v58 = vmul.f32 0.015625, %v746_v57 }
 0x171   : > { %v760_v59 = vadd.f32 1e-05, %v756_v58 }
 0x172   : > { %v749_v60 = vpop.xlane.xlu1 %748  ;;  %v752_v61 = vpop.xlane.xlu0 %751 }
 0x173   : > { %2895 = vrsqrt.f32 %v760_v59  ;;  %v757_v62 = vmul.f32 0.015625, %v749_v60  ;;  %v758_v63 = vmul.f32 0.015625, %v752_v61 }
 0x175   : > { %v761_v0 = vadd.f32 1e-05, %v757_v62  ;;  %v762_v1 = vadd.f32 1e-05, %v758_v63 }
 0x176   : > { %v755_v2 = vpop.xlane.xlu1 %754 }
 0x177   : > { %2897 = vrsqrt.f32 %v761_v0  ;;  %v759_v3 = vmul.f32 0.015625, %v755_v2 }
 0x178   : > { %2899 = vrsqrt.f32 %v762_v1 }
 0x179   : > { %v763_v7 = vadd.f32 1e-05, %v759_v3 }
 0x17b   : > { %2901 = vrsqrt.f32 %v763_v7 }
 0x17d   : > { %v2896_v8 = vpop.eup %2895 }
 0x17e   : > { %v768_v11 = vmul.f32 %v2896_v8, %v3399_v16 }
 0x180   : > { %v778_v13 = vmul.f32 %v2395_v10, %v768_v11 }
 0x181   : > { %v2898_v14 = vpop.eup %2897 }
 0x182   : > { %v2900_v15 = vpop.eup %2899  ;;  %v788_v18 = vadd.f32 %v2396_v12, %v778_v13  ;;  %v769_v19 = vmul.f32 %v2898_v14, %v3409_v24 }
 0x183   : > { %v770_v20 = vmul.f32 %v2900_v15, %v3402_v17 }
 0x184   : > { %2397 = vmatmul.mubr.msk.f32.vlgmr.msra.gmra.mrb[0].mxu1 %vm718_vm1, %v788_v18  ;;  %v779_v21 = vmul.f32 %v2395_v10, %v769_v19 }
 0x185   : > { %v2902_v22 = vpop.eup %2901  ;;  %890 = vmatprep.mubr.f32.mxu1 %v3103_v54  ;;  %v780_v23 = vmul.f32 %v2395_v10, %v770_v20 }
 0x186   : > { %v789_v16 = vadd.f32 %v2396_v12, %v779_v21  ;;  %v771_v26 = vmul.f32 %v2902_v22, %v3412_v25 }
 0x187   : > { %v790_v27 = vadd.f32 %v2396_v12, %v780_v23 }
 0x188   : > { %2398 = vmatmul.mubr.msk.f32.gmra.mrb[2].mxu1 %vm718_vm1, %v789_v16  ;;  %v781_v28 = vmul.f32 %v2395_v10, %v771_v26 }
 0x189   : > { %896 = vmatprep.mubr.f32.mxu1 %v3103_v54 }
 0x18a   : > { %v791_v17 = vadd.f32 %v2396_v12, %v781_v28 }
 0x18c   : > { %2399 = vmatmul.mubr.msk.f32.gmra.mrb[4].mxu1 %vm718_vm1, %v790_v27 }
 0x18d   : > { %902 = vmatprep.mubr.f32.mxu1 %v3103_v54 }
 0x190   : > { %2400 = vmatmul.mubr.msk.f32.gmra.mrb[6].mxu1 %vm718_vm1, %v791_v17 }
 0x257   : > { %v886_v24 = vpop.f32.mrb[0].mxu1 }
 0x258   : > { %v3460_v29 = vpop.f32.mrb[1].mxu1  ;;  %2559 = vmatprep.mubr.msk.f32.mxu1 %vm929_vm2, %v886_v24 }
 0x25b   : > { %v892_v25 = vpop.f32.mrb[2].mxu1 }
 0x25c   : > { %v3463_v30 = vpop.f32.mrb[3].mxu1  ;;  %v2865_v31 = vpack.i.bf16 %v892_v25, %v886_v24 }
 0x25d   : > { %v2885_v32 = vpack.i.bf16 %v3463_v30, %v3460_v29  ;;  %v2663_v33 = vpack.c.bf16 %v3463_v30, %v3460_v29 }
 0x25e   : > { %2866 = vrot.lane.b32.xlu0 %v2865_v31, %s3104_s16 }
 0x25f   : > { %v898_v34 = vpop.f32.mrb[4].mxu1 }
 0x260   : > { %v3469_v35 = vpop.f32.mrb[5].mxu1 }
 0x262   : > { %1184 = vrot.lane.b32.xlu0 %v886_v24, %s3105_s20 }
 0x263   : > { %v904_v36 = vpop.f32.mrb[6].mxu1 }
 0x264   : > { %v3472_v37 = vpop.f32.mrb[7].mxu1  ;;  %v2870_v38 = vpack.i.bf16 %v904_v36, %v898_v34 }
 0x265   : > { %v2890_v39 = vpack.i.bf16 %v3472_v37, %v3469_v35  ;;  %v2667_v40 = vpack.c.bf16 %v3472_v37, %v3469_v35 }
 0x266   : > { %1188 = vrot.lane.b32.xlu0 %v898_v34, %s3105_s20  ;;  %2871 = vrot.lane.b32.xlu1 %v2870_v38, %s3104_s16 }
 0x26a   : > { %2876 = vrot.lane.b32.xlu1 %v2865_v31, %s3106_s28 }
 0x26e   : > { %2881 = vrot.lane.b32.xlu1 %v2870_v38, %s3106_s28 }
 0x272   : > { %1186 = vrot.lane.b32.xlu1 %v892_v25, %s3105_s20 }
 0x276   : > { %1190 = vrot.lane.b32.xlu1 %v904_v36, %s3105_s20 }
 0x2d0   : > { %v2867_v41 = vpop.permute.xlu0 %2866 }
 0x2d1   : > { %v2869_v42 = vunpack.i.h.bf16 %v2867_v41  ;;  %v2868_v43 = vunpack.i.l.bf16 %v2867_v41 }
 0x2d3   : > { %v2651_v45 = vpack.c.bf16 %v2869_v42, %v2868_v43 }
 0x2d4   : > { %v1185_v46 = vpop.permute.xlu0 %1184 }
 0x2d5   : > { %2653 = vmatprep.subr.msk.bf16.mxu1 %vm3485_vm3, %v2651_v45  ;;  %2587 = vmatprep.mubr.msk.f32.mxu0 %vm929_vm2, %v1185_v46 }
 0x2d6   : > { %2656 = vmatpush3.bf16.xpose.msk.msra.mxu1 %vm3485_vm3, %v2651_v45 }
 0x2d8   : > { %v2872_v47 = vpop.permute.xlu1 %2871  ;;  %v1189_v61 = vpop.permute.xlu0 %1188 }
 0x2d9   : > { %v2874_v48 = vunpack.i.h.bf16 %v2872_v47  ;;  %v2873_v49 = vunpack.i.l.bf16 %v2872_v47 }
 0x2db   : > { %v2657_v50 = vpack.c.bf16 %v2874_v48, %v2873_v49 }
 0x2dc   : > { %v2877_v51 = vpop.permute.xlu1 %2876 }
 0x2dd   : > { %v2879_v52 = vunpack.i.h.bf16 %v2877_v51  ;;  %v2878_v53 = vunpack.i.l.bf16 %v2877_v51  ;;  %2659 = vmatprep.subr.msk.bf16.mxu1 %vm3485_vm3, %v2657_v50 }
 0x2de   : > { %2662 = vmatpush3.bf16.xpose.msk.msra.mxu1 %vm3485_vm3, %v2657_v50 }
 0x2df   : > { %2664 = vmatprep.subr.bf16.mxu1 %v2663_v33  ;;  %v2671_v55 = vpack.c.bf16 %v2879_v52, %v2878_v53 }
 0x2e0   : > { %v2882_v56 = vpop.permute.xlu1 %2881 }
 0x2e1   : > { %v2884_v57 = vunpack.i.h.bf16 %v2882_v56  ;;  %v2883_v58 = vunpack.i.l.bf16 %v2882_v56  ;;  %2673 = vmatprep.subr.msk.bf16.mxu0 %vm3485_vm3, %v2671_v55 }
 0x2e2   : > { %2676 = vmatpush3.bf16.xpose.msk.msra.mxu0 %vm3485_vm3, %v2671_v55 }
 0x2e3   : > { %v2677_v59 = vpack.c.bf16 %v2884_v57, %v2883_v58 }
 0x2e4   : > { %v1187_v60 = vpop.permute.xlu1 %1186 }
 0x2e5   : > { %2560 = vmatmul.mubr.msk.f32.vlgmr.msra.gmra.mrb[8].mxu1 %vm929_vm2, %v892_v25  ;;  %2679 = vmatprep.subr.msk.bf16.mxu0 %vm3485_vm3, %v2677_v59 }
 0x2e6   : > { %2562 = vmatprep.mubr.msk.f32.mxu1 %vm929_vm2, %v898_v34  ;;  %2666 = vmatpush3.bf16.msra.mxu1 %v2663_v33 }
 0x2e7   : > { %2668 = vmatprep.subr.bf16.mxu1 %v2667_v40 }
 0x2e8   : > { %v1191_v62 = vpop.permute.xlu1 %1190 }
 0x2e9   : > { %2563 = vmatmul.mubr.msk.f32.gmra.mrb[10].mxu1 %vm929_vm2, %v904_v36 }
 0x2ea   : > { %2670 = vmatpush3.bf16.msra.mxu1 %v2667_v40  ;;  %2682 = vmatpush3.bf16.xpose.msk.msra.mxu0 %vm3485_vm3, %v2677_v59 }
 0x2f1   : > { %2588 = vmatmul.mubr.msk.f32.vlgmr.msra.gmra.mrb[0].mxu0 %vm929_vm2, %v1187_v60 }
 0x2f2   : > { %2590 = vmatprep.mubr.msk.f32.mxu0 %vm929_vm2, %v1189_v61 }
 0x2f5   : > { %2591 = vmatmul.mubr.msk.f32.gmra.mrb[2].mxu0 %vm929_vm2, %v1191_v62 }
 0x3b8   : > { %v2561_v63 = vpop.f32.mrb[8].mxu1 }
 0x3b9   : > { %v1032_v0 = vmul.f32 0.17677669, %v2561_v63  ;;  %v1012_v1 = vpop.f32.mrb[9].mxu1 }
 0x3ba   : > { %v1031_v2 = vmul.f32 0.17677669, %v1012_v1 }
 0x3bb   : > { %v1038_v3 = vsel %vm929_vm2, %v1032_v0, -inf }
 0x3bc   : > { %1039 = vmax.xlane.f32.xlu1 %v1038_v3  ;;  %v2564_v7 = vpop.f32.mrb[10].mxu1  ;;  %v1035_v8 = vsel %vm929_vm2, %v1031_v2, -inf }
 0x3bd   : > { %v1034_v10 = vmul.f32 0.17677669, %v2564_v7  ;;  %1036 = vmax.xlane.f32.xlu0 %v1035_v8  ;;  %v1022_v11 = vpop.f32.mrb[11].mxu1 }
 0x3be   : > { %v1033_v13 = vmul.f32 0.17677669, %v1022_v11 }
 0x3bf   : > { %v1044_v12 = vsel %vm929_vm2, %v1034_v10, -inf }
 0x3c0   : > { %v1041_v15 = vsel %vm929_vm2, %v1033_v13, -inf }
 0x3c1   : > { %1045 = vmax.xlane.f32.xlu0 %v1044_v12 }
 0x3c4   : > { %v2589_v14 = vpop.f32.mrb[0].mxu0 }
 0x3c5   : > { %v1302_v18 = vmul.f32 0.17677669, %v2589_v14  ;;  %v1282_v19 = vpop.f32.mrb[1].mxu0  ;;  %1042 = vmax.xlane.f32.xlu0 %v1041_v15 }
 0x3c6   : > { %v1301_v20 = vmul.f32 0.17677669, %v1282_v19 }
 0x3c7   : > { %v1308_v21 = vsel %vm929_vm2, %v1302_v18, -inf }
 0x3c8   : > { %v2592_v22 = vpop.f32.mrb[2].mxu0  ;;  %1309 = vmax.xlane.f32.xlu1 %v1308_v21  ;;  %v1305_v16 = vsel %vm929_vm2, %v1301_v20, -inf }
 0x3c9   : > { %v1304_v23 = vmul.f32 0.17677669, %v2592_v22  ;;  %v1292_v26 = vpop.f32.mrb[3].mxu0  ;;  %1306 = vmax.xlane.f32.xlu0 %v1305_v16 }
 0x3ca   : > { %v1303_v27 = vmul.f32 0.17677669, %v1292_v26 }
 0x3cb   : > { %v1314_v28 = vsel %vm929_vm2, %v1304_v23, -inf }
 0x3cc   : > { %1315 = vmax.xlane.f32.xlu1 %v1314_v28  ;;  %v1311_v17 = vsel %vm929_vm2, %v1303_v27, -inf }
 0x3cd   : > { %1312 = vmax.xlane.f32.xlu0 %v1311_v17 }
 0x449   : > { %v1040_v24 = vpop.xlane.xlu1 %1039 }
 0x44a   : > { %v1048_v25 = vsub.f32 %v1032_v0, %v1040_v24  ;;  %v1037_v31 = vpop.xlane.xlu0 %1036 }
 0x44b   : > { %v1047_v33 = vsub.f32 %v1031_v2, %v1037_v31 }
 0x44c   : > { %v1053_v34 = vmul.f32 1.442695, %v1048_v25 }
 0x44d   : > { %v1051_v36 = vmul.f32 1.442695, %v1047_v33 }
 0x44e   : > { %2903 = vpow2.f32 %v1053_v34  ;;  %v1046_v38 = vpop.xlane.xlu0 %1045 }
 0x44f   : > { %2905 = vpow2.f32 %v1051_v36  ;;  %v1050_v41 = vsub.f32 %v1034_v10, %v1046_v38 }
 0x451   : > { %v1057_v48 = vmul.f32 1.442695, %v1050_v41 }
 0x452   : > { %v1043_v40 = vpop.xlane.xlu0 %1042 }
 0x453   : > { %v1049_v42 = vsub.f32 %v1033_v13, %v1043_v40 }
 0x455   : > { %v1310_v43 = vpop.xlane.xlu1 %1309  ;;  %v1055_v51 = vmul.f32 1.442695, %v1049_v42 }
 0x456   : > { %v1318_v44 = vsub.f32 %v1302_v18, %v1310_v43  ;;  %v1307_v45 = vpop.xlane.xlu0 %1306 }
 0x457   : > { %v1317_v46 = vsub.f32 %v1301_v20, %v1307_v45 }
 0x458   : > { %v2904_v47 = vpop.eup %2903  ;;  %v1323_v49 = vmul.f32 1.442695, %v1318_v44 }
 0x459   : > { %v2906_v50 = vpop.eup %2905  ;;  %v1321_v52 = vmul.f32 1.442695, %v1317_v46  ;;  %v1316_v53 = vpop.xlane.xlu1 %1315  ;;  %v1062_v55 = vsel %vm929_vm2, %v2904_v47, 0.0  ;;  %v913_v46 = vld [vmem:[%s3342_s27 + $0x20] sm:$0xff] }
 0x45a   : > { %2907 = vpow2.f32 %v1323_v49  ;;  %v1320_v56 = vsub.f32 %v1304_v23, %v1316_v53  ;;  %1063 = vadd.xlane.f32.xlu1 %v1062_v55  ;;  %v1313_v57 = vpop.xlane.xlu0 %1312  ;;  %v1059_v58 = vsel %vm929_vm2, %v2906_v50, 0.0  ;;  %v915_v49 = vld [vmem:[%s3342_s27 + $0x30] sm:$0xff]  ;;  %v910_v53 = vld [vmem:[%s3342_s27 + $0x8] sm:$0xff] }
 0x45b   : > { %2909 = vpow2.f32 %v1321_v52  ;;  %v1319_v59 = vsub.f32 %v1303_v27, %v1313_v57  ;;  %1060 = vadd.xlane.f32.xlu0 %v1059_v58  ;;  %v909_v52 = vld [vmem:[%s3342_s27] sm:$0xff] }
 0x45c   : > { %2911 = vpow2.f32 %v1057_v48  ;;  %v1327_v60 = vmul.f32 1.442695, %v1320_v56  ;;  %v2699_v55 = vpack.c.bf16 %v910_v53, %v909_v52  ;;  %v1770_v53 = vld [vmem:[%s3359_s3 + $0x20] sm:$0xff] }
 0x45d   : > { %2913 = vpow2.f32 %v1055_v51  ;;  %v1325_v61 = vmul.f32 1.442695, %v1319_v59 }
 0x45e   : > { %2915 = vpow2.f32 %v1327_v60  ;;  %v911_v60 = vld [vmem:[%s3342_s27 + $0x10] sm:$0xff] }
 0x45f   : > { %2917 = vpow2.f32 %v1325_v61  ;;  %v912_v61 = vld [vmem:[%s3342_s27 + $0x18] sm:$0xff] }
 0x464   : > { %v3522_v62 = vpop.eup %2907 }
 0x465   : > { %v2910_v63 = vpop.eup %2909  ;;  %v1332_v0 = vsel %vm929_vm2, %v3522_v62, 0.0 }
 0x466   : > { %v2912_v1 = vpop.eup %2911  ;;  %1333 = vadd.xlane.f32.xlu1 %v1332_v0  ;;  %v1329_v2 = vsel %vm929_vm2, %v2910_v63, 0.0  ;;  %v2703_v0 = vpack.c.bf16 %v912_v61, %v911_v60  ;;  %v1776_v60 = vld [vmem:[%s3359_s3 + $0x50] sm:$0xff] }
 0x467   : > { %v2914_v3 = vpop.eup %2913  ;;  %1330 = vadd.xlane.f32.xlu0 %v1329_v2  ;;  %v1068_v7 = vsel %vm929_vm2, %v2912_v1, 0.0 }
 0x468   : > { %v3528_v8 = vpop.eup %2915  ;;  %v1065_v10 = vsel %vm929_vm2, %v2914_v3, 0.0 }
 0x469   : > { %v2918_v11 = vpop.eup %2917  ;;  %v1338_v12 = vsel %vm929_vm2, %v3528_v8, 0.0 }
 0x46a   : > { %1069 = vadd.xlane.f32.xlu1 %v1068_v7  ;;  %v1335_v13 = vsel %vm929_vm2, %v2918_v11, 0.0  ;;  %v2433_v7 = vld [vmem:[%s3963_s22] ss:$0 sm:$0xff] }
 0x46b   : > { %1066 = vadd.xlane.f32.xlu0 %v1065_v10 }
 0x46e   : > { %1339 = vadd.xlane.f32.xlu1 %v1338_v12 }
 0x46f   : > { %1336 = vadd.xlane.f32.xlu0 %v1335_v13 }
 0x47f   : > { %2891 = vrot.lane.b32.xlu1 %v2890_v39, %s3105_s20 }
 0x485   : > { %2886 = vrot.lane.b32.xlu0 %v2885_v32, %s3105_s20 }
 0x4e7   : > { %v1064_v14 = vpop.xlane.xlu1 %1063 }
 0x4e8   : > { %2919 = vrcp.f32 %v1064_v14  ;;  %v1061_v15 = vpop.xlane.xlu0 %1060 }
 0x4e9   : > { %2921 = vrcp.f32 %v1061_v15 }
 0x4f2   : > { %v2920_v18 = vpop.eup %2919 }
 0x4f3   : > { %v2922_v19 = vpop.eup %2921  ;;  %v1080_v20 = vmul.f32 %v2920_v18, %v2904_v47  ;;  %v1334_v21 = vpop.xlane.xlu1 %1333  ;;  %v914_v47 = vld [vmem:[%s3342_s27 + $0x28] sm:$0xff] }
 0x4f4   : > { %v1331_v22 = vpop.xlane.xlu0 %1330  ;;  %v1079_v16 = vmul.f32 %v2922_v19, %v2906_v50  ;;  %v2691_v48 = vpack.c.bf16 %v914_v47, %v913_v46  ;;  %v916_v50 = vld [vmem:[%s3342_s27 + $0x38] sm:$0xff]  ;;  %v1766_v46 = vld [vmem:[%s3359_s3] sm:$0xff]  ;;  %v1768_v47 = vld [vmem:[%s3359_s3 + $0x10] sm:$0xff] }
 0x4f5   : > { %1084 = vst.msk [vmem:[%s3379_s0 + $0x8] sm:$0xff] %vm929_vm2, %v1080_v20  ;;  %2923 = vrcp.f32 %v1331_v22  ;;  %v2695_v51 = vpack.c.bf16 %v916_v50, %v915_v49  ;;  %v2709_v49 = vpack.c.bf16 %v1768_v47, %v1766_v46  ;;  %v1771_v50 = vld [vmem:[%s3359_s3 + $0x28] sm:$0xff]  ;;  %v1913_v46 = vld [vmem:[%s3371_s12 + $0x50] sm:$0xff]  ;;  %v1914_v47 = vld [vmem:[%s3371_s12 + $0x58] sm:$0xff] }
 0x4f6   : > { %2573 = vmatprep.mubr.msk.f32.mxu1 %vm929_vm2, %v1079_v16  ;;  %1083 = vst.msk [vmem:[%s3379_s0] sm:$0xff] %vm929_vm2, %v1079_v16  ;;  %2692 = vmatprep.subr.bf16.mxu0 %v2691_v48 }
 0x4f7   : > { %v1070_v35 = vpop.xlane.xlu1 %1069  ;;  %2574 = vmatmul.mubr.msk.f32.vlgmr.msra.gmra.mrb[12].mxu1 %vm929_vm2, %v1080_v20  ;;  %2694 = vmatpush3.bf16.msra.mxu0 %v2691_v48 }
 0x4f8   : > { %2925 = vrcp.f32 %v1070_v35  ;;  %v1067_v29 = vpop.xlane.xlu0 %1066  ;;  %2696 = vmatprep.subr.bf16.mxu0 %v2695_v51 }
 0x4f9   : > { %2927 = vrcp.f32 %v1067_v29 }
 0x4fa   : > { %2929 = vrcp.f32 %v1334_v21 }
 0x4fb   : > { %v1340_v30 = vpop.xlane.xlu1 %1339  ;;  %2698 = vmatpush3.bf16.msra.mxu0 %v2695_v51  ;;  %v1773_v51 = vld [vmem:[%s3359_s3 + $0x38] sm:$0xff] }
 0x4fc   : > { %v1337_v32 = vpop.xlane.xlu0 %1336  ;;  %2700 = vmatprep.subr.bf16.mxu0 %v2699_v55  ;;  %v2711_v52 = vpack.c.bf16 %v1773_v51, %v1771_v50  ;;  %v2745_v50 = vpack.c.bf16 %v1914_v47, %v1913_v46 }
 0x4fd   : > { %2931 = vrcp.f32 %v1337_v32 }
 0x4fe   : > { %2933 = vrcp.f32 %v1340_v30 }
 0x4ff   : > { %v2892_v37 = vpop.permute.xlu1 %2891  ;;  %v2924_v23 = vpop.eup %2923 }
 0x500   : > { %v2887_v39 = vpop.permute.xlu0 %2886  ;;  %v2894_v26 = vunpack.i.h.bf16 %v2892_v37  ;;  %v2893_v27 = vunpack.i.l.bf16 %v2892_v37  ;;  %v3553_v38 = vmul.f32 %v2924_v23, %v2910_v63 }
 0x501   : > { %v2889_v28 = vunpack.i.h.bf16 %v2887_v39  ;;  %v2888_v17 = vunpack.i.l.bf16 %v2887_v39 }
 0x502   : > { %v2926_v24 = vpop.eup %2925  ;;  %v2687_v36 = vpack.c.bf16 %v2894_v26, %v2893_v27 }
 0x503   : > { %v2928_v25 = vpop.eup %2927  ;;  %v2683_v31 = vpack.c.bf16 %v2889_v28, %v2888_v17  ;;  %v1082_v33 = vmul.f32 %v2926_v24, %v2912_v1 }
 0x504   : > { %v1081_v34 = vmul.f32 %v2928_v25, %v2914_v3  ;;  %v2930_v40 = vpop.eup %2929 }
 0x505   : > { %2684 = vmatprep.subr.bf16.mxu1 %v2683_v31  ;;  %1086 = vst.msk [vmem:[%s3379_s0 + $0x18] sm:$0xff] %vm929_vm2, %v1082_v33  ;;  %v3559_v42 = vmul.f32 %v2930_v40, %v3522_v62 }
 0x506   : > { %2576 = vmatprep.mubr.msk.f32.mxu1 %vm929_vm2, %v1081_v34  ;;  %1085 = vst.msk [vmem:[%s3379_s0 + $0x10] sm:$0xff] %vm929_vm2, %v1081_v34  ;;  %2686 = vmatpush3.bf16.msra.mxu1 %v2683_v31 }
 0x507   : > { %2577 = vmatmul.mubr.msk.f32.gmra.mrb[14].mxu1 %vm929_vm2, %v1082_v33  ;;  %2688 = vmatprep.subr.bf16.mxu1 %v2687_v36  ;;  %v2932_v41 = vpop.eup %2931 }
 0x508   : > { %2601 = vmatprep.mubr.msk.f32.mxu1 %vm929_vm2, %v3553_v38  ;;  %v2934_v43 = vpop.eup %2933  ;;  %v3561_v44 = vmul.f32 %v2932_v41, %v2918_v11  ;;  %v1767_v41 = vld [vmem:[%s3359_s3 + $0x8] sm:$0xff] }
 0x509   : > { %v3568_v45 = vmul.f32 %v2934_v43, %v3528_v8  ;;  %v1769_v43 = vld [vmem:[%s3359_s3 + $0x18] sm:$0xff] }
 0x50a   : > { %2690 = vmatpush3.bf16.msra.mxu1 %v2687_v36  ;;  %v2707_v48 = vpack.c.bf16 %v1769_v43, %v1767_v41 }
 0x50c   : > { %2708 = vmatprep.subr.bf16.mxu1 %v2707_v48  ;;  %v1931_v48 = vld [vmem:[%s3371_s12 + $0xe0] sm:$0xff] }
 0x50d   : > { %2602 = vmatmul.mubr.msk.f32.vlgmr.msra.gmra.mrb[16].mxu1 %vm929_vm2, %v3559_v42 }
 0x50e   : > { %2604 = vmatprep.mubr.msk.f32.mxu1 %vm929_vm2, %v3561_v44  ;;  %2710 = vmatpush1.bf16.msra.mxu1 %v2709_v49  ;;  %v1932_v49 = vld [vmem:[%s3371_s12 + $0xe8] sm:$0xff] }
 0x50f   : > { %2712 = vmatprep.subr.bf16.mxu1 %v2711_v52  ;;  %v2747_v51 = vpack.c.bf16 %v1932_v49, %v1931_v48 }
 0x511   : > { %2605 = vmatmul.mubr.msk.f32.gmra.mrb[18].mxu1 %vm929_vm2, %v3568_v45 }
 0x512   : > { %1870 = vmatprep.mubr.f32.mxu1 %v3103_v54 }
 0x5ca   : > { %v2575_v56 = vpop.f32.mrb[12].mxu1 }
 0x5cb   : > { %v1165_v57 = vpop.f32.mrb[13].mxu1 }
 0x5da   : > { %v2578_v58 = vpop.f32.mrb[14].mxu1 }
 0x5db   : > { %v1175_v59 = vpop.f32.mrb[15].mxu1 }
 0x5e0   : > { %v2603_v62 = vpop.f32.mrb[16].mxu1 }
 0x5e1   : > { %v1464_v63 = vpop.f32.mrb[17].mxu1 }
 0x5e2   : > { %2615 = vmatprep.mubr.msk.f32.mxu0 %vm929_vm2, %v1464_v63  ;;  %v1778_v63 = vld [vmem:[%s3359_s3 + $0x60] sm:$0xff] }
 0x5e3   : > { %2616 = vmatmul.mubr.msk.f32.vlgmr.msra.gmra.mrb[4].mxu0 %vm929_vm2, %v2603_v62  ;;  %v1781_v62 = vld [vmem:[%s3359_s3 + $0x78] sm:$0xff] }
 0x5e4   : > { %v2606_v1 = vpop.f32.mrb[18].mxu1  ;;  %2702 = vmatpush3.bf16.msra.mxu0 %v2699_v55  ;;  %v1772_v55 = vld [vmem:[%s3359_s3 + $0x30] sm:$0xff] }
 0x5e5   : > { %v1474_v2 = vpop.f32.mrb[19].mxu1  ;;  %2704 = vmatprep.subr.bf16.mxu0 %v2703_v0 }
 0x5e6   : > { %2618 = vmatprep.mubr.msk.f32.mxu0 %vm929_vm2, %v1474_v2  ;;  %v1919_v2 = vld [vmem:[%s3371_s12 + $0x80] sm:$0xff] }
 0x5e7   : > { %2619 = vmatmul.mubr.msk.f32.gmra.mrb[6].mxu0 %vm929_vm2, %v2606_v1 }
 0x5e8   : > { %2706 = vmatpush3.bf16.msra.mxu0 %v2703_v0  ;;  %2629 = vmatprep.mubr.msk.f32.mxu0 %vm929_vm2, %v1165_v57  ;;  %v1775_v57 = vld [vmem:[%s3359_s3 + $0x48] sm:$0xff]  ;;  %v1780_v0 = vld [vmem:[%s3359_s3 + $0x70] sm:$0xff] }
 0x5e9   : > { %v2721_v1 = vpack.c.bf16 %v1780_v0, %v1778_v63 }
 0x5eb   : > { %2630 = vmatmul.mubr.msk.f32.vlgmr.msra.gmra.mrb[4].mxu0 %vm929_vm2, %v2575_v56  ;;  %v2713_v56 = vpack.c.bf16 %v1772_v55, %v1770_v53 }
 0x5ec   : > { %2632 = vmatprep.mubr.msk.f32.mxu0 %vm929_vm2, %v1175_v59  ;;  %v1774_v59 = vld [vmem:[%s3359_s3 + $0x40] sm:$0xff] }
 0x5ed   : > { %2714 = vmatpush1.bf16.msra.mxu1 %v2713_v56  ;;  %v2717_v61 = vpack.c.bf16 %v1776_v60, %v1774_v59 }
 0x5ef   : > { %2633 = vmatmul.mubr.msk.f32.gmra.mrb[6].mxu0 %vm929_vm2, %v2578_v58 }
 0x6be   : > { %v2631_v3 = vpop.f32.mrb[4].mxu0 }
 0x6bf   : > { %v1678_v8 = vadd.f32 %v2631_v3, %v3386_v6  ;;  %v1658_v10 = vpop.f32.mrb[5].mxu0  ;;  %v1920_v3 = vld [vmem:[%s3371_s12 + $0x88] sm:$0xff] }
 0x6c0   : > { %v1677_v11 = vadd.f32 %v1658_v10, %v3382_v4  ;;  %v1921_v10 = vld [vmem:[%s3371_s12 + $0x90] sm:$0xff] }
 0x6c1   : > { %v3596_v12 = vadd.f32 %v2433_v7, %v1678_v8  ;;  %v2723_v8 = vpack.c.bf16 %v1920_v3, %v1919_v2  ;;  %v2434_v3 = vld [vmem:[%s3964_s17] ss:$0 sm:$0xff] }
 0x6c2   : > { %v3598_v13 = vadd.f32 %v2433_v7, %v1677_v11  ;;  %v2634_v14 = vpop.f32.mrb[6].mxu0  ;;  %v1922_v11 = vld [vmem:[%s3371_s12 + $0x98] sm:$0xff] }
 0x6c3   : > { %v1680_v15 = vadd.f32 %v2634_v14, %v3392_v9  ;;  %v1668_v18 = vpop.f32.mrb[7].mxu0  ;;  %v1697_v19 = vsel %vm718_vm1, %v3596_v12, 0.0  ;;  %2724 = vmatprep.subr.bf16.mxu0 %v2723_v8 }
 0x6c4   : > { %v1679_v20 = vadd.f32 %v1668_v18, %v3384_v5  ;;  %1698 = vadd.xlane.f32.xlu0 %v1697_v19  ;;  %v1694_v6 = vsel %vm718_vm1, %v3598_v13, 0.0  ;;  %v1905_v18 = vld [vmem:[%s3371_s12 + $0x10] sm:$0xff]  ;;  %v1906_v19 = vld [vmem:[%s3371_s12 + $0x18] sm:$0xff] }
 0x6c5   : > { %v3606_v21 = vadd.f32 %v2433_v7, %v1680_v15  ;;  %1695 = vadd.xlane.f32.xlu1 %v1694_v6  ;;  %v2727_v15 = vpack.c.bf16 %v1922_v11, %v1921_v10  ;;  %v1924_v6 = vld [vmem:[%s3371_s12 + $0xa8] sm:$0xff]  ;;  %v2435_v10 = vld [vmem:[%s3966_s26] ss:$0 sm:$0xff] }
 0x6c6   : > { %v3608_v4 = vadd.f32 %v2433_v7, %v1679_v20  ;;  %v1903_v7 = vld [vmem:[%s3371_s12] sm:$0xff] }
 0x6c7   : > { %v1703_v22 = vsel %vm718_vm1, %v3606_v21, 0.0  ;;  %v1923_v20 = vld [vmem:[%s3371_s12 + $0xa0] sm:$0xff] }
 0x6c8   : > { %v1700_v9 = vsel %vm718_vm1, %v3608_v4, 0.0 }
 0x6c9   : > { %1704 = vadd.xlane.f32.xlu1 %v1703_v22  ;;  %1701 = vadd.xlane.f32.xlu0 %v1700_v9  ;;  %v2729_v22 = vpack.c.bf16 %v1906_v19, %v1905_v18  ;;  %v2731_v9 = vpack.c.bf16 %v1924_v6, %v1923_v20 }
 0x751   : > { %v1699_v16 = vpop.xlane.xlu0 %1698 }
 0x752   : > { %v1707_v35 = vmul.f32 0.015625, %v1699_v16  ;;  %v1696_v5 = vpop.xlane.xlu1 %1695  ;;  %v1907_v16 = vld [vmem:[%s3371_s12 + $0x20] sm:$0xff] }
 0x753   : > { %v1706_v29 = vmul.f32 0.015625, %v1696_v5  ;;  %v1925_v5 = vld [vmem:[%s3371_s12 + $0xb0] sm:$0xff] }
 0x754   : > { %v3615_v30 = vsub.f32 %v3596_v12, %v1707_v35  ;;  %v1908_v35 = vld [vmem:[%s3371_s12 + $0x28] sm:$0xff] }
 0x755   : > { %v3618_v32 = vsub.f32 %v3598_v13, %v1706_v29  ;;  %v1926_v29 = vld [vmem:[%s3371_s12 + $0xb8] sm:$0xff] }
 0x756   : > { %v1705_v37 = vpop.xlane.xlu1 %1704  ;;  %v1702_v39 = vpop.xlane.xlu0 %1701  ;;  %v1715_v23 = vmul.f32 %v3615_v30, %v3615_v30 }
 0x757   : > { %v1709_v26 = vmul.f32 0.015625, %v1705_v37  ;;  %v1708_v27 = vmul.f32 0.015625, %v1702_v39  ;;  %v1714_v28 = vmul.f32 %v3618_v32, %v3618_v32  ;;  %v2733_v37 = vpack.c.bf16 %v1908_v35, %v1907_v16  ;;  %v1915_v16 = vld [vmem:[%s3371_s12 + $0x60] sm:$0xff]  ;;  %v1916_v35 = vld [vmem:[%s3371_s12 + $0x68] sm:$0xff] }
 0x758   : > { %v1721_v17 = vsel %vm718_vm1, %v1715_v23, 0.0  ;;  %v2735_v39 = vpack.c.bf16 %v1926_v29, %v1925_v5  ;;  %v1909_v23 = vld [vmem:[%s3371_s12 + $0x30] sm:$0xff]  ;;  %v2749_v5 = vpack.c.bf16 %v1916_v35, %v1915_v16  ;;  %v1934_v29 = vld [vmem:[%s3371_s12 + $0xf8] sm:$0xff] }
 0x759   : > { %v3626_v24 = vsub.f32 %v3606_v21, %v1709_v26  ;;  %v3629_v25 = vsub.f32 %v3608_v4, %v1708_v27  ;;  %1722 = vadd.xlane.f32.xlu1 %v1721_v17  ;;  %v1718_v31 = vsel %vm718_vm1, %v1714_v28, 0.0  ;;  %v1910_v26 = vld [vmem:[%s3371_s12 + $0x38] sm:$0xff]  ;;  %v1927_v27 = vld [vmem:[%s3371_s12 + $0xc0] sm:$0xff]  ;;  %v1928_v28 = vld [vmem:[%s3371_s12 + $0xc8] sm:$0xff] }
 0x75a   : > { %1719 = vadd.xlane.f32.xlu0 %v1718_v31  ;;  %v2737_v17 = vpack.c.bf16 %v1910_v26, %v1909_v23  ;;  %v2739_v31 = vpack.c.bf16 %v1928_v28, %v1927_v27  ;;  %v1918_v23 = vld [vmem:[%s3371_s12 + $0x78] sm:$0xff]  ;;  %v1784_v27 = vlaneseq }
 0x75b   : > { %v1717_v33 = vmul.f32 %v3626_v24, %v3626_v24  ;;  %v1716_v34 = vmul.f32 %v3629_v25, %v3629_v25 }
 0x75c   : > { %v1785_v28 = vshrl.u32 %v1784_v27, 7 }
 0x75d   : > { %v1727_v36 = vsel %vm718_vm1, %v1717_v33, 0.0  ;;  %v1724_v40 = vsel %vm718_vm1, %v1716_v34, 0.0  ;;  %v1911_v33 = vld [vmem:[%s3371_s12 + $0x40] sm:$0xff]  ;;  %v1912_v34 = vld [vmem:[%s3371_s12 + $0x48] sm:$0xff] }
 0x75e   : > { %1728 = vadd.xlane.f32.xlu1 %v1727_v36  ;;  %1725 = vadd.xlane.f32.xlu0 %v1724_v40  ;;  %v1929_v36 = vld [vmem:[%s3371_s12 + $0xd0] sm:$0xff]  ;;  %v1930_v40 = vld [vmem:[%s3371_s12 + $0xd8] sm:$0xff]  ;;  %v2741_v41 = vpack.c.bf16 %v1912_v34, %v1911_v33 }
 0x75f   : > { %v2743_v43 = vpack.c.bf16 %v1930_v40, %v1929_v36 }
 0x76f   : > { %1359 = vrot.lane.b32.xlu1 %v3559_v42, %s3106_s28  ;;  %v1777_v42 = vld [vmem:[%s3359_s3 + $0x58] sm:$0xff] }
 0x770   : > { %v2715_v58 = vpack.c.bf16 %v1777_v42, %v1775_v57 }
 0x772   : > { %2716 = vmatprep.subr.bf16.mxu1 %v2715_v58 }
 0x773   : > { %1361 = vrot.lane.b32.xlu1 %v3561_v44, %s3106_s28  ;;  %v1779_v44 = vld [vmem:[%s3359_s3 + $0x68] sm:$0xff]  ;;  %2718 = vmatpush1.bf16.msra.mxu1 %v2717_v61 }
 0x774   : > { %1357 = vrot.lane.b32.xlu0 %v3553_v38, %s3106_s28  ;;  %v2719_v38 = vpack.c.bf16 %v1781_v62, %v1779_v44 }
 0x776   : > { %2720 = vmatprep.subr.bf16.mxu1 %v2719_v38 }
 0x777   : > { %1363 = vrot.lane.b32.xlu1 %v3568_v45, %s3106_s28  ;;  %2722 = vmatpush1.bf16.msra.mxu1 %v2721_v1  ;;  %v1904_v45 = vld [vmem:[%s3371_s12 + $0x8] sm:$0xff] }
 0x778   : > { %v2725_v14 = vpack.c.bf16 %v1904_v45, %v1903_v7 }
 0x77a   : > { %2726 = vmatpush3.bf16.msra.mxu0 %v2725_v14 }
 0x77b   : > { %2728 = vmatprep.subr.bf16.mxu0 %v2727_v15 }
 0x77e   : > { %2730 = vmatpush3.bf16.msra.mxu0 %v2729_v22 }
 0x77f   : > { %2732 = vmatprep.subr.bf16.mxu0 %v2731_v9 }
 0x782   : > { %2734 = vmatpush3.bf16.msra.mxu0 %v2733_v37 }
 0x783   : > { %2736 = vmatprep.subr.bf16.mxu0 %v2735_v39  ;;  %v1917_v39 = vld [vmem:[%s3371_s12 + $0x70] sm:$0xff] }
 0x784   : > { %v2753_v26 = vpack.c.bf16 %v1918_v23, %v1917_v39 }
 0x786   : > { %2738 = vmatpush3.bf16.msra.mxu0 %v2737_v17  ;;  %v1786_v17 = vsub.s32 0, %v1785_v28 }
 0x787   : > { %2740 = vmatprep.subr.bf16.mxu0 %v2739_v31  ;;  %v1790_v31 = vsub.s32 1, %v1785_v28 }
 0x78a   : > { %2742 = vmatpush3.bf16.msra.mxu0 %v2741_v41 }
 0x78b   : > { %2744 = vmatprep.subr.bf16.mxu0 %v2743_v43 }
 0x78e   : > { %2746 = vmatpush3.bf16.msra.mxu0 %v2745_v50 }
 0x78f   : > { %2748 = vmatprep.subr.bf16.mxu0 %v2747_v51 }
 0x792   : > { %2750 = vmatpush3.bf16.msra.mxu0 %v2749_v5 }
 0x7e6   : > { %v1723_v52 = vpop.xlane.xlu1 %1722 }
 0x7e7   : > { %v1731_v53 = vmul.f32 0.015625, %v1723_v52  ;;  %v1720_v55 = vpop.xlane.xlu0 %1719 }
 0x7e8   : > { %v1730_v56 = vmul.f32 0.015625, %v1720_v55 }
 0x7e9   : > { %v1735_v57 = vadd.f32 1e-05, %v1731_v53 }
 0x7ea   : > { %v1734_v42 = vadd.f32 1e-05, %v1730_v56 }
 0x7eb   : > { %2935 = vrsqrt.f32 %v1735_v57  ;;  %v1729_v58 = vpop.xlane.xlu1 %1728  ;;  %v1726_v59 = vpop.xlane.xlu0 %1725 }
 0x7ec   : > { %2937 = vrsqrt.f32 %v1734_v42  ;;  %v1733_v60 = vmul.f32 0.015625, %v1729_v58  ;;  %v1732_v61 = vmul.f32 0.015625, %v1726_v59 }
 0x7ee   : > { %v1737_v44 = vadd.f32 1e-05, %v1733_v60  ;;  %v1736_v62 = vadd.f32 1e-05, %v1732_v61 }
 0x7ef   : > { %v1360_v38 = vpop.permute.xlu1 %1359  ;;  %v1358_v63 = vpop.permute.xlu0 %1357 }
 0x7f0   : > { %1371 = vst.msk [vmem:[%s3379_s0 + $0x8] sm:$0xff] %vm1369_vm4, %v1360_v38  ;;  %1370 = vst.msk [vmem:[%s3379_s0] sm:$0xff] %vm1369_vm4, %v1358_v63  ;;  %2939 = vrsqrt.f32 %v1736_v62 }
 0x7f1   : > { %2941 = vrsqrt.f32 %v1737_v44 }
 0x7f3   : > { %v1362_v0 = vpop.permute.xlu1 %1361 }
 0x7f4   : > { %1372 = vst.msk [vmem:[%s3379_s0 + $0x10] sm:$0xff] %vm1369_vm4, %v1362_v0 }
 0x7f5   : > { %v2936_v1 = vpop.eup %2935 }
 0x7f6   : > { %v2938_v2 = vpop.eup %2937  ;;  %v1743_v45 = vmul.f32 %v2936_v1, %v3615_v30  ;;  %v2440_v1 = vld [vmem:[%s698_s10] ss:$0 sm:$0xff] }
 0x7f7   : > { %v1742_v7 = vmul.f32 %v2938_v2, %v3618_v32  ;;  %v1364_v8 = vpop.permute.xlu1 %1363 }
 0x7f8   : > { %1373 = vst.msk [vmem:[%s3379_s0 + $0x18] sm:$0xff] %vm1369_vm4, %v1364_v8  ;;  %v1753_v18 = vmul.f32 %v2434_v3, %v1743_v45 }
 0x7f9   : > { %v1752_v11 = vmul.f32 %v2434_v3, %v1742_v7 }
 0x7fa   : > { %v2940_v14 = vpop.eup %2939  ;;  %v1763_v30 = vadd.f32 %v2435_v10, %v1753_v18 }
 0x7fb   : > { %v1762_v15 = vadd.f32 %v2435_v10, %v1752_v11  ;;  %v2942_v19 = vpop.eup %2941  ;;  %v1744_v20 = vmul.f32 %v2940_v14, %v3629_v25 }
 0x7fc   : > { %v1745_v6 = vmul.f32 %v2942_v19, %v3626_v24  ;;  %v1933_v24 = vld [vmem:[%s3371_s12 + $0xf0] sm:$0xff] }
 0x7fd   : > { %2436 = vmatmul.mubr.msk.f32.vlgmr.msra.gmra.mrb[20].mxu1 %vm718_vm1, %v1762_v15  ;;  %v1754_v32 = vmul.f32 %v2434_v3, %v1744_v20  ;;  %v2751_v37 = vpack.c.bf16 %v1934_v29, %v1933_v24 }
 0x7fe   : > { %1876 = vmatprep.mubr.f32.mxu1 %v3103_v54  ;;  %v1755_v9 = vmul.f32 %v2434_v3, %v1745_v6 }
 0x7ff   : > { %v1764_v22 = vadd.f32 %v2435_v10, %v1754_v32  ;;  %2752 = vmatprep.subr.bf16.mxu0 %v2751_v37 }
 0x800   : > { %v1765_v25 = vadd.f32 %v2435_v10, %v1755_v9  ;;  %2754 = vmatpush3.bf16.msra.mxu0 %v2753_v26 }
 0x801   : > { %2437 = vmatmul.mubr.msk.f32.gmra.mrb[22].mxu1 %vm718_vm1, %v1763_v30 }
 0x802   : > { %1882 = vmatprep.mubr.f32.mxu1 %v3103_v54 }
 0x805   : > { %2438 = vmatmul.mubr.msk.f32.gmra.mrb[24].mxu1 %vm718_vm1, %v1764_v22 }
 0x806   : > { %1888 = vmatprep.mubr.f32.mxu1 %v3103_v54  ;;  %v1782_v54 = vld [vmem:[%s3365_s25] sm:$0x3] }
 0x807   : > { %v1787_v33 = vrot.slane %v1782_v54, %v1786_v17  ;;  %v1791_v34 = vrot.slane %v1782_v54, %v1790_v31 }
 0x809   : > { %2439 = vmatmul.mubr.msk.f32.gmra.mrb[26].mxu1 %vm718_vm1, %v1765_v25 }
 0x8d0   : > { %v1872_v36 = vpop.f32.mrb[20].mxu1 }
 0x8d1   : > { %v1873_v40 = vadd.f32 %v1872_v36, %v1787_v33  ;;  %v1874_v41 = vpop.f32.mrb[21].mxu1 }
 0x8d2   : > { %v1875_v43 = vadd.f32 %v1874_v41, %v1791_v34 }
 0x8d3   : > { %v1895_v48 = vmax.f32 %v1873_v40, 0.0 }
 0x8d4   : > { %v1896_v46 = vmax.f32 %v1875_v43, 0.0  ;;  %v1878_v47 = vpop.f32.mrb[22].mxu1 }
 0x8d5   : > { %v1879_v49 = vadd.f32 %v1878_v47, %v1787_v33  ;;  %v1880_v50 = vpop.f32.mrb[23].mxu1 }
 0x8d6   : > { %v1881_v51 = vadd.f32 %v1880_v50, %v1791_v34  ;;  %2006 = vmatprep.mubr.f32.mxu0 %v1896_v46 }
 0x8d7   : > { %2007 = vmatmul.mubr.f32.vlgmr.msra.gmra.mrb[8].mxu0 %v1895_v48  ;;  %v1897_v55 = vmax.f32 %v1879_v49, 0.0 }
 0x8d8   : > { %v1898_v52 = vmax.f32 %v1881_v51, 0.0  ;;  %v1884_v53 = vpop.f32.mrb[24].mxu1 }
 0x8d9   : > { %v1885_v56 = vadd.f32 %v1884_v53, %v1787_v33  ;;  %v1886_v57 = vpop.f32.mrb[25].mxu1 }
 0x8da   : > { %v1887_v42 = vadd.f32 %v1886_v57, %v1791_v34  ;;  %2011 = vmatprep.mubr.f32.mxu0 %v1898_v52 }
 0x8db   : > { %2012 = vmatmul.mubr.f32.gmra.mrb[10].mxu0 %v1897_v55  ;;  %v1899_v60 = vmax.f32 %v1885_v56, 0.0 }
 0x8dc   : > { %v1900_v58 = vmax.f32 %v1887_v42, 0.0  ;;  %v1890_v59 = vpop.f32.mrb[26].mxu1 }
 0x8dd   : > { %v1891_v61 = vadd.f32 %v1890_v59, %v1787_v33  ;;  %v1892_v44 = vpop.f32.mrb[27].mxu1 }
 0x8de   : > { %v1893_v62 = vadd.f32 %v1892_v44, %v1791_v34  ;;  %2016 = vmatprep.mubr.f32.mxu0 %v1900_v58  ;;  %v2443_v44 = vld [vmem:[%s3969_s14] ss:$0 sm:$0xff] (!%p2441_p8) }
 0x8df   : > { %2017 = vmatmul.mubr.f32.gmra.mrb[12].mxu0 %v1899_v60  ;;  %v1901_v63 = vmax.f32 %v1891_v61, 0.0  ;;  %v2442_v60 = vld [vmem:[%s3968_s13] ss:$0 sm:$0xff] (!%p2441_p8) }
 0x8e0   : > { %v1902_v38 = vmax.f32 %v1893_v62, 0.0 }
 0x8e2   : > { %2021 = vmatprep.mubr.f32.mxu0 %v1902_v38 }
 0x8e3   : > { %2022 = vmatmul.mubr.f32.gmra.mrb[14].mxu0 %v1901_v63 }
 0x9aa   : > { %v2539_v0 = vpop.f32.mrb[8].mxu0 }
 0x9ab   : > { %v2540_v2 = vpop.f32.mrb[9].mxu0 }
 0x9ac   : > { %v2541_v3 = vadd.f32 %v2540_v2, %v2539_v0 }
 0x9ae   : > { %v2009_v7 = vadd.f32 %v2541_v3, %v2440_v1  ;;  %v2542_v8 = vpop.f32.mrb[10].mxu0 }
 0x9af   : > { %v2543_v45 = vpop.f32.mrb[11].mxu0 }
 0x9b0   : > { %v2027_v10 = vadd.f32 %v2009_v7, %v3598_v13  ;;  %v2544_v11 = vadd.f32 %v2543_v45, %v2542_v8 }
 0x9b2   : > { %2031 = vst.msk [vmem:[#allocation2] sm:$0xff] %vm718_vm1, %v2027_v10  ;;  %v2014_v14 = vadd.f32 %v2544_v11, %v2440_v1  ;;  %v2545_v15 = vpop.f32.mrb[12].mxu0 }
 0x9b3   : > { %v2546_v18 = vpop.f32.mrb[13].mxu0 }
 0x9b4   : > { %v2028_v19 = vadd.f32 %v2014_v14, %v3596_v12  ;;  %v2547_v20 = vadd.f32 %v2546_v18, %v2545_v15  ;;  %v2041_v12 = vsel (!%p2441_p8), %vm718_vm1, %v2027_v10, 0.0 }
 0x9b5   : > { %2042 = vadd.xlane.f32.xlu0 (!%p2441_p8), %v2041_v12 }
 0x9b6   : > { %2032 = vst.msk [vmem:[#allocation2 + $0x8] sm:$0xff] %vm718_vm1, %v2028_v19  ;;  %v2019_v30 = vadd.f32 %v2547_v20, %v2440_v1  ;;  %v2548_v32 = vpop.f32.mrb[14].mxu0  ;;  %v2044_v35 = vsel (!%p2441_p8), %vm718_vm1, %v2028_v19, 0.0 }
 0x9b7   : > { %v2549_v6 = vpop.f32.mrb[15].mxu0 }
 0x9b8   : > { %v2029_v22 = vadd.f32 %v2019_v30, %v3608_v4  ;;  %v2550_v9 = vadd.f32 %v2549_v6, %v2548_v32  ;;  %2038 = sbr.rel (%p2441_p8) target bundleno = 2808 (0xaf8), region = 84 }
 0x9b9   : > { %2045 = vadd.xlane.f32.xlu0 (!%p2441_p8), %v2044_v35 }
 0x9ba   : > { %2033 = vst.msk [vmem:[#allocation2 + $0x10] sm:$0xff] %vm718_vm1, %v2029_v22  ;;  %v2024_v13 = vadd.f32 %v2550_v9, %v2440_v1  ;;  %v2047_v16 = vsel (!%p2441_p8), %vm718_vm1, %v2029_v22, 0.0 }
 0x9bb   : > { %2048 = vadd.xlane.f32.xlu1 (!%p2441_p8), %v2047_v16 }
 0x9bc   : > { %v2030_v25 = vadd.f32 %v2024_v13, %v3606_v21 }
 0x9be   : > { %2034 = vst.msk [vmem:[#allocation2 + $0x18] sm:$0xff] %vm718_vm1, %v2030_v25  ;;  %v2050_v4 = vsel (!%p2441_p8), %vm718_vm1, %v2030_v25, 0.0 }
 0x9bf   : > { %2051 = vadd.xlane.f32.xlu1 %v2050_v4 }
 0xa42   : > { %v2043_v5 = vpop.xlane.xlu0 %2042 }
 0xa43   : > { %v2053_v21 = vmul.f32 0.015625, %v2043_v5 }
 0xa45   : > { %v2057_v37 = vsub.f32 %v2027_v10, %v2053_v21 }
 0xa46   : > { %v2046_v23 = vpop.xlane.xlu0 %2045 }
 0xa47   : > { %v2054_v27 = vmul.f32 0.015625, %v2046_v23  ;;  %v2061_v17 = vmul.f32 %v2057_v37, %v2057_v37 }
 0xa48   : > { %v2049_v24 = vpop.xlane.xlu1 %2048 }
 0xa49   : > { %v2055_v29 = vmul.f32 0.015625, %v2049_v24  ;;  %v2058_v31 = vsub.f32 %v2028_v19, %v2054_v27  ;;  %v2065_v34 = vsel %vm718_vm1, %v2061_v17, 0.0 }
 0xa4a   : > { %2066 = vadd.xlane.f32.xlu0 %v2065_v34 }
 0xa4b   : > { %v2059_v39 = vsub.f32 %v2029_v22, %v2055_v29  ;;  %v2062_v40 = vmul.f32 %v2058_v31, %v2058_v31 }
 0xa4c   : > { %v2052_v26 = vpop.xlane.xlu1 %2051 }
 0xa4d   : > { %v2056_v28 = vmul.f32 0.015625, %v2052_v26  ;;  %v2063_v54 = vmul.f32 %v2059_v39, %v2059_v39  ;;  %v2068_v43 = vsel %vm718_vm1, %v2062_v40, 0.0 }
 0xa4e   : > { %2069 = vadd.xlane.f32.xlu1 %v2068_v43 }
 0xa4f   : > { %v2060_v33 = vsub.f32 %v2030_v25, %v2056_v28  ;;  %v2071_v36 = vsel %vm718_vm1, %v2063_v54, 0.0 }
 0xa50   : > { %2072 = vadd.xlane.f32.xlu0 %v2071_v36 }
 0xa51   : > { %v2064_v41 = vmul.f32 %v2060_v33, %v2060_v33 }
 0xa53   : > { %v2074_v46 = vsel %vm718_vm1, %v2064_v41, 0.0 }
 0xa54   : > { %2075 = vadd.xlane.f32.xlu1 %v2074_v46 }
 0xad7   : > { %v2067_v47 = vpop.xlane.xlu0 %2066 }
 0xad8   : > { %v2077_v48 = vmul.f32 0.015625, %v2067_v47 }
 0xada   : > { %v2081_v49 = vadd.f32 1e-05, %v2077_v48 }
 0xadb   : > { %v2070_v50 = vpop.xlane.xlu1 %2069 }
 0xadc   : > { %2943 = vrsqrt.f32 %v2081_v49  ;;  %v2078_v52 = vmul.f32 0.015625, %v2070_v50 }
 0xadd   : > { %v2073_v51 = vpop.xlane.xlu0 %2072 }
 0xade   : > { %v2079_v53 = vmul.f32 0.015625, %v2073_v51  ;;  %v2082_v55 = vadd.f32 1e-05, %v2078_v52 }
 0xae0   : > { %v2083_v56 = vadd.f32 1e-05, %v2079_v53  ;;  %2945 = vrsqrt.f32 %v2082_v55 }
 0xae1   : > { %v2076_v57 = vpop.xlane.xlu1 %2075 }
 0xae2   : > { %v2080_v42 = vmul.f32 0.015625, %v2076_v57  ;;  %2947 = vrsqrt.f32 %v2083_v56 }
 0xae4   : > { %v2084_v58 = vadd.f32 1e-05, %v2080_v42 }
 0xae6   : > { %2949 = vrsqrt.f32 %v2084_v58  ;;  %v2944_v59 = vpop.eup %2943 }
 0xae7   : > { %v2089_v61 = vmul.f32 %v2944_v59, %v2057_v37 }
 0xae9   : > { %v2099_v62 = vmul.f32 %v2442_v60, %v2089_v61 }
 0xaea   : > { %v2946_v38 = vpop.eup %2945 }
 0xaeb   : > { %v2109_v0 = vadd.f32 %v2443_v44, %v2099_v62  ;;  %v2090_v1 = vmul.f32 %v2946_v38, %v2058_v31 }
 0xaec   : > { %v2948_v63 = vpop.eup %2947 }
 0xaed   : > { %v2091_v2 = vmul.f32 %v2948_v63, %v2059_v39  ;;  %2113 = vst.msk [vmem:[%s3377_s7] sm:$0xff] %vm718_vm1, %v2109_v0  ;;  %v2100_v3 = vmul.f32 %v2442_v60, %v2090_v1 }
 0xaef   : > { %v2101_v8 = vmul.f32 %v2442_v60, %v2091_v2  ;;  %v2110_v45 = vadd.f32 %v2443_v44, %v2100_v3 }
 0xaf0   : > { %v2950_v7 = vpop.eup %2949 }
 0xaf1   : > { %v2092_v10 = vmul.f32 %v2950_v7, %v2060_v33  ;;  %v2111_v11 = vadd.f32 %v2443_v44, %v2101_v8  ;;  %2114 = vst.msk [vmem:[%s3377_s7 + $0x8] sm:$0xff] %vm718_vm1, %v2110_v45 }
 0xaf3   : > { %v2102_v14 = vmul.f32 %v2442_v60, %v2092_v10  ;;  %2115 = vst.msk [vmem:[%s3377_s7 + $0x10] sm:$0xff] %vm718_vm1, %v2111_v11 }
 0xaf5   : > { %v2112_v15 = vadd.f32 %v2443_v44, %v2102_v14 }
 0xaf7   : > { %2116 = vst.msk [vmem:[%s3377_s7 + $0x18] sm:$0xff] %vm718_vm1, %v2112_v15 }
 0xaf8 PF: > { %s3970_s15 = sld [smem:[#allocation15_spill]]  ;;  %s3971_s16 = sld [smem:[#allocation13_spill]] }
 0xaf9   : > { %s3973_s22 = sld [smem:[#allocation36_spill]]  ;;  %s2136_s17 = sshll.u32 %s3377_s7, 4  ;;  %s3767_s17 = int_to_ptr.vmem [resolvable:$true] %s2136_s17 }
 0xafa   : > { %s2951_s9 = scalar_lea.vmem %s3767_s17, 512  ;;  %s3107_s26 = smov [#allocation3]  }
 0xafb   : > { %p2952_p9 = scmp.ne.s32.totalorder %s3767_s17, %s2951_s9  ;;  %s2955_s25 = sshll.u32 %s3107_s26, 4  ;;  %s2956_s25 = int_to_ptr.vmem [resolvable:$false] %s2955_s25 }
 0xafc   : > { %s2957_s12 = scalar_lea.vmem %s2956_s25, 1024  ;;  %p2958_p0 = scmp.lt.s32.totalorder %s3767_s17, %s2956_s25 }
 0xafd   : > { %p2953_p10 = pnand %p2952_p9, %p3262_p3  ;;  %p2959_p1 = scmp.lt.s32.totalorder %s2957_s12, %s2951_s9 }
 0xafe   : > { %s2458_s28 = sshll.u32 %s3970_s15, 9  ;;  %s3975_s30 = sand.u32 1, %s3971_s16  }
 0xaff   : > { %s3974_s3 = smov %s3973_s22  ;;  %s3764_s21 = scalar_lea.hbm %s3973_s22, %s2458_s28 }
 0xb00   : > { %s3771_s23 = scalar_lea.sflag [#allocation4], %s3975_s30  ;;  %p2954_p11 = pneg %p2953_p10 }
 0xb01   : > { %p2960_p4 = por %p2959_p1, %p2958_p0 }
 0xb03   : > { %p2961_p2 = pnand %p2960_p4, %p2954_p11 }
 0xb05   : > { %2964 = shalt.err (!%p2961_p2)
}
 0xb06   : > { %s2965_s7 = scalar_lea.hbm %s3764_s21, 512  ;;  %s2969_s10 = scalar_lea.hbm %s3974_s3, 1024 }
 0xb07   : > { %p2966_p5 = scmp.ne.s32.totalorder %s3764_s21, %s2965_s7  ;;  %p2970_p9 = scmp.lt.u32.totalorder %s3764_s21, %s3974_s3 }
 0xb08   : > { %p2971_p10 = scmp.lt.u32.totalorder %s2969_s10, %s2965_s7  ;;  %p2973_p0 = scmp.lt.u32.totalorder %s2965_s7, %s3764_s21 }
 0xb09   : > { %p2967_p6 = pnand %p2966_p5, %p3262_p3 }
 0xb0a   : > { %p2972_p11 = por %p2971_p10, %p2970_p9 }
 0xb0b   : > { %p2968_p8 = pneg %p2967_p6 }
 0xb0c   : > { %p2974_p1 = por %p2973_p0, %p2972_p11 }
 0xb0e   : > { %p2975_p4 = pnand %p2974_p1, %p2968_p8 }
 0xb10   : > { %2978 = shalt.err (!%p2975_p4)
}
 0xb11   : > { %s3108_s11 = smov 128   ;;  %s3976_s14 = sld [smem:[#allocation10_spill]] }
 0xb12   : > { %s3109_s28 = smov 8   ;;  %s2448_s27 = sshll.u32 %s3085_s24, 2 }
 0xb13   : > { %2759 = dma.vmem_to_hbm [thread:$0]  (%p3262_p3), %s3767_s17, 512, %s3764_s21, %s3771_s23, %s3108_s11, %s3108_s11, %s3109_s28  }
 0xb14   : > { %s2449_s19 = sshll.u32 %s3970_s15, 4  ;;  %s2154_s30 = sshll.u32 %s3379_s0, 4  ;;  %s3801_s30 = int_to_ptr.vmem [resolvable:$true] %s2154_s30 }
 0xb15   : > { %s2151_s22 = sadd.s32 %s2449_s19, %s2448_s27  ;;  %s3978_s12 = sld [smem:[#allocation37_spill]] }
 0xb16   : > { %s2450_s9 = sshll.u32 %s2151_s22, 7  ;;  %s2979_s29 = scalar_lea.vmem %s3801_s30, 512 }
 0xb17   : > { %s3979_s20 = sand.u32 1, %s3976_s14   ;;  %p2980_p3 = scmp.ne.s32.totalorder %s3801_s30, %s2979_s29 }
 0xb18   : > { %s3810_s4 = scalar_lea.sflag [#allocation6], %s3979_s20  ;;  %s3110_s24 = smov [#allocation5]  }
 0xb19   : > { %p2981_p2 = pnand %p2980_p3, %p3291_p12  ;;  %s2983_s0 = sshll.u32 %s3110_s24, 4  ;;  %s2984_s0 = int_to_ptr.vmem [resolvable:$false] %s2983_s0 }
 0xb1a   : > { %s2985_s15 = scalar_lea.vmem %s2984_s0, 1024  ;;  %p2986_p6 = scmp.lt.s32.totalorder %s3801_s30, %s2984_s0 }
 0xb1b   : > { %s3806_s7 = scalar_lea.hbm %s3978_s12, %s2450_s9  ;;  %p2982_p5 = pneg %p2981_p2 }
 0xb1c   : > { %p2987_p8 = scmp.lt.s32.totalorder %s2985_s15, %s2979_s29 }
 0xb1e   : > { %p2988_p9 = por %p2987_p8, %p2986_p6 }
 0xb20   : > { %p2989_p10 = pnand %p2988_p9, %p2982_p5 }
 0xb22   : > { %2992 = shalt.err (!%p2989_p10)
}
 0xb23   : > { %s2993_s21 = scalar_lea.hbm %s3806_s7, 512  ;;  %s2997_s10 = scalar_lea.hbm %s3978_s12, 4096 }
 0xb24   : > { %p2994_p11 = scmp.ne.s32.totalorder %s3806_s7, %s2993_s21  ;;  %p2998_p4 = scmp.lt.u32.totalorder %s3806_s7, %s3978_s12 }
 0xb25   : > { %p2999_p3 = scmp.lt.u32.totalorder %s2997_s10, %s2993_s21  ;;  %p3001_p5 = scmp.lt.u32.totalorder %s2993_s21, %s3806_s7 }
 0xb26   : > { %p2995_p0 = pnand %p2994_p11, %p3291_p12 }
 0xb27   : > { %p3000_p2 = por %p2999_p3, %p2998_p4 }
 0xb28   : > { %p2996_p1 = pneg %p2995_p0 }
 0xb29   : > { %p3002_p6 = por %p3001_p5, %p3000_p2 }
 0xb2b   : > { %p3003_p8 = pnand %p3002_p6, %p2996_p1 }
 0xb2d   : > { %3006 = shalt.err (!%p3003_p8)
}
 0xb2e   : > { %2760 = dma.vmem_to_hbm [thread:$0]  (%p3291_p12), %s3801_s30, 512, %s3806_s7, %s3810_s4, %s3108_s11, %s3108_s11, %s3109_s28  }
 0xb2f PF: > { %s3980_s14 = sld [smem:[#allocation18_spill]]  ;;  %s3981_s27 = sld [smem:[#allocation12_spill]] }
 0xb35   : > { %p2770_p9 = scmp.ge.s32.totalorder %s3980_s14, 2  ;;  %s2169_s22 = sand.u32 1, %s3981_s27  }
 0xb36   : > { %s2170_s9 = scalar_lea.sflag [#allocation4], %s2169_s22 }
 0xb37   : > { %p2764_p10 = pnand %p2770_p9, %p3279_p7 }
 0xb39   : > { %3052 = dma.done.wait (!%p2764_p10), %s2170_s9, 512  }
 0xb3a   : > { %3054 = vsyncadd (!%p2764_p10), %s2170_s9, 4294966784  ;;  %s3983_s26 = sld [smem:[#allocation9_spill]]  ;;  %p2767_p11 = pnand %p2770_p9, %p3303_p13 }
 0xb40   : > { %s2178_s25 = sand.u32 1, %s3983_s26  }
 0xb41   : > { %s2179_s20 = scalar_lea.sflag [#allocation6], %s2178_s25 }
 0xb42   : > { %3056 = dma.done.wait (!%p2767_p11), %s2179_s20, 512  }
 0xb43   : > { %3058 = vsyncadd (!%p2767_p11), %s2179_s20, 4294966784  ;;  %s32_s28 = sadd.s32 1, %s3980_s14   ;;  %s3985_s18 = sld [smem:[#allocation10_spill]] }
 0xb44   : > { %p29_p12 = scmp.ge.s32.totalorder %s32_s28, 10   ;;  %s3986_s19 = sld [smem:[#allocation11_spill]] }
 0xb45   : > { %s3987_s20 = sld [smem:[#allocation25_spill]]  ;;  %s3988_s21 = sld [smem:[#allocation13_spill]] }
 0xb46   : > { %s3989_s22 = sld [smem:[#allocation14_spill]]  ;;  %s3990_s23 = sld [smem:[#allocation24_spill]] }
 0xb47   : > { %s3991_s24 = sld [smem:[#allocation16_spill]]  ;;  %s3992_s25 = sld [smem:[#allocation17_spill]] }
 0xb48   : > { %s3993_s26 = sld [smem:[#allocation19_spill]]  ;;  %s3994_s27 = sld [smem:[#allocation21_spill]] }
 0xb49   :  { %31 = sbr.rel (!%p29_p12) target bundleno = 21 (0x15), region = 169 }
 0xb50   :  { %2184 = vsyncpa [#allocation4], 1 }
 0xb51   :  { %2186 = vsyncpa [#allocation4 + $0x1], 1 }
 0xb52   :  { %2187 = vsyncpa [#allocation6], 1 }
 0xb53   :  { %2189 = vsyncpa [#allocation6 + $0x1], 1 }

</bundles_post_ra>
